<compile_context>
chip_gen: v7x
topology: tpu7x:2x2x1
jax: 0.10.0
libtpu: 0.0.40
codegen_flags: <defaults>
</compile_context>

<pallas_src>
import functools
import math

import jax
import jax.numpy as jnp
from jax.experimental import pallas as pl
from jax.experimental.pallas import tpu as pltpu


def _round_up(n, m):
    return ((n + m - 1) // m) * m


def _fold_weight(w, mm_dtype):
    # PyTorch Conv1d weight (C_out, C_in, K) -> (C_out, K*C_in), column index k*C_in + i,
    # matching an im2col operand whose rows are the K taps concatenated along sublanes.
    c_out, c_in, k = w.shape
    return jnp.transpose(w, (0, 2, 1)).reshape(c_out, k * c_in).astype(mm_dtype)


# ----------------------------------------------------------------------------
# Fused forward pass (single pallas_call)
# ----------------------------------------------------------------------------
def semantic_encoder_forward(params, x, *, block_l=512, mm_dtype=jnp.bfloat16,
                             vmem_limit_bytes=None):
    """x: (B, input_channels, L) in PyTorch NCL layout. Returns (B, output_channels, L)."""
    B, C_in, L = x.shape
    w0 = params["initial_conv"]["w"]
    w1 = params["res_conv1"]["w"]
    w2 = params["res_conv2"]["w"]
    w3 = params["final_conv"]["w"]
    C_enc, C_in_w, K = w0.shape
    C_out = w3.shape[0]
    assert C_in_w == C_in, (C_in_w, C_in)
    assert w1.shape == (C_enc, C_enc, K) and w2.shape == (C_enc, C_enc, K)
    assert w3.shape == (C_out, C_enc, K)
    assert K % 2 == 1, "only odd kernel sizes ('same' padding) are supported"
    P = (K - 1) // 2
    H = 4 * P                      # halo depth the fused 4-conv pipe needs on each side
    has_halo = H > 0

    # Time tile: multiple of 128 so time stays lane-dense for reads, stores and the
    # next-block halo trick.  Bigger tiles amortize per-grid-step overhead; re-derive
    # against the 64 MiB VMEM budget on v7x for large channel counts.
    TL = max(128, _round_up(min(block_l, _round_up(L, 128)), 128))
    assert TL % 128 == 0 and TL >= 128
    n_tiles = pl.cdiv(L, TL)
    blks = TL // 128               # 128-col blocks per tile (for the right-halo read)
    nb128 = pl.cdiv(L, 128)        # number of 128-col blocks covering L

    x = x.astype(jnp.float32)

    # Small, VMEM-resident operands (folded weights + biases).
    w0f = _fold_weight(w0, mm_dtype)               # (C_enc, K*C_in)
    w1f = _fold_weight(w1, mm_dtype)               # (C_enc, K*C_enc)
    w2f = _fold_weight(w2, mm_dtype)               # (C_enc, K*C_enc)
    w3f = _fold_weight(w3, mm_dtype)               # (C_out, K*C_enc)

    def _bias(p):
        b = p.get("b")
        if b is None:
            b = jnp.zeros((C_enc,), jnp.float32)
        return b.reshape(C_enc, 1).astype(jnp.float32)

    b1 = _bias(params["res_conv1"])
    b2 = _bias(params["res_conv2"])

    # -------------------------- kernel --------------------------
    def mask_cols(a, base):
        # Zero columns whose global time index is outside [0, L): this is each Conv1d's
        # implicit zero padding AND the scrub of Pallas boundary-block garbage.
        cols = base + jax.lax.broadcasted_iota(jnp.int32, (1, a.shape[1]), 1)
        return jnp.where((cols >= 0) & (cols < L), a, 0.0)

    def conv_block(xw, w_ref, bias_ref=None):
        # xw: (C_prev, W) f32, already activated + zero-masked.
        # Returns (C_next, W - (K-1)) f32.  K taps folded into one MXU contraction.
        W = xw.shape[1]
        Wout = W - (K - 1)
        if K == 1:
            xcat = xw
        else:
            xcat = jnp.concatenate([xw[:, k:k + Wout] for k in range(K)], axis=0)
        acc = jnp.dot(w_ref[...], xcat.astype(mm_dtype),
                      preferred_element_type=jnp.float32)
        if bias_ref is not None:
            acc = acc + bias_ref[...]
        return acc

    def kernel(*refs):
        it = iter(refs)
        xcur_ref = next(it)                               # (C_in, TL)
        xnext_ref = next(it) if has_halo else None        # (C_in, 128)
        w0_ref, w1_ref, w2_ref, w3_ref = (next(it) for _ in range(4))
        b1_ref, b2_ref = next(it), next(it)
        y_ref = next(it)                                  # (C_out, TL)
        carry_ref = next(it) if has_halo else None        # (C_in, 128)

        l = pl.program_id(1)
        base0 = l * TL - H                                # global col of x_win[:, 0]

        xcur = xcur_ref[...]                              # f32

        if has_halo:
            @pl.when(l == 0)
            def _init_carry():                            # left of col 0 is zero padding
                carry_ref[...] = jnp.zeros_like(carry_ref)

            left = carry_ref[...]                         # cols [l*TL-128, l*TL)
            right = xnext_ref[...]                        # cols [(l+1)*TL, (l+1)*TL+128)
            # Lane-aligned concat (all pieces are multiples of 128 lanes), then one
            # static slice down to the TL + 2H window actually needed.
            x_ext = jnp.concatenate([left, xcur, right], axis=1)   # (C_in, TL+256)
            x_win = x_ext[:, 128 - H: 128 + TL + H]                # (C_in, TL+2H)
            # Stash the left halo for the next tile (always real data when one exists).
            carry_ref[...] = xcur[:, TL - 128:]
        else:
            x_win = xcur

        x_win = mask_cols(x_win, base0)

        # layer 1: initial_conv (no bias), then the inplace ReLU of residual_blocks.
        h = conv_block(x_win, w0_ref)                     # (C_enc, TL+6P)
        r0 = mask_cols(jnp.maximum(h, 0.0), base0 + P)    # relu(h0), zero-padded

        # layer 2: res conv1 (+bias) -> relu.
        h = conv_block(r0, w1_ref, b1_ref)                # (C_enc, TL+4P)
        h = mask_cols(jnp.maximum(h, 0.0), base0 + 2 * P)

        # layer 3: res conv2 (+bias) + residual relu(h0)  (inplace-ReLU semantics).
        h = conv_block(h, w2_ref, b2_ref)                 # (C_enc, TL+2P)
        h = h + r0[:, 2 * P: 2 * P + h.shape[1]]
        h = mask_cols(h, base0 + 3 * P)

        # layer 4: final_conv (no bias) -> lane-dense (C_out, TL) store in NCL layout.
        y_ref[...] = conv_block(h, w3_ref).astype(y_ref.dtype)

    # -------------------------- specs --------------------------
    in_specs = [pl.BlockSpec((None, C_in, TL), lambda b, l: (b, 0, l))]
    args = [x]
    if has_halo:
        in_specs.append(
            pl.BlockSpec((None, C_in, 128),
                         lambda b, l: (b, 0, jnp.minimum((l + 1) * blks, nb128 - 1))))
        args.append(x)
    for wf in (w0f, w1f, w2f, w3f):
        in_specs.append(pl.BlockSpec(wf.shape, lambda b, l: (0, 0)))
        args.append(wf)
    for bf in (b1, b2):
        in_specs.append(pl.BlockSpec(bf.shape, lambda b, l: (0, 0)))
        args.append(bf)

    out_spec = pl.BlockSpec((None, C_out, TL), lambda b, l: (b, 0, l))
    scratch = [pltpu.VMEM((C_in, 128), jnp.float32)] if has_halo else []

    y = pl.pallas_call(
        kernel,
        out_shape=jax.ShapeDtypeStruct((B, C_out, L), jnp.float32),
        grid=(B, n_tiles),
        in_specs=in_specs,
        out_specs=out_spec,
        scratch_shapes=scratch,
        compiler_params=pltpu.CompilerParams(
            dimension_semantics=("parallel", "arbitrary" if has_halo else "parallel"),
            vmem_limit_bytes=vmem_limit_bytes),
    )(*args)
    return y


# ----------------------------------------------------------------------------
# Parameters (mirror torch.nn.Conv1d default init; structure comes from shapes)
# ----------------------------------------------------------------------------
def init_semantic_encoder_params(key, *, input_channels, output_channels,
                                 encode_channels, kernel_size, bias=True):
    def conv_init(k, c_out, c_in, ksz, with_bias):
        kw, kb = jax.random.split(k)
        bound = 1.0 / math.sqrt(c_in * ksz)
        p = {"w": jax.random.uniform(kw, (c_out, c_in, ksz), jnp.float32, -bound, bound)}
        if with_bias:
            p["b"] = jax.random.uniform(kb, (c_out,), jnp.float32, -bound, bound)
        return p

    k1, k2, k3, k4 = jax.random.split(key, 4)
    return {
        "initial_conv": conv_init(k1, encode_channels, input_channels, kernel_size, False),
        "res_conv1": conv_init(k2, encode_channels, encode_channels, kernel_size, bias),
        "res_conv2": conv_init(k3, encode_channels, encode_channels, kernel_size, bias),
        "final_conv": conv_init(k4, output_channels, encode_channels, kernel_size, False),
    }


# ----------------------------------------------------------------------------
# Pure-JAX reference (mirrors the PyTorch module, incl. inplace-ReLU semantics)
# ----------------------------------------------------------------------------
def _conv1d_ref(x_ncl, w, bias):
    K = w.shape[2]
    P = (K - 1) // 2
    out = jax.lax.conv_general_dilated(
        x_ncl, w, window_strides=(1,), padding=[(P, P)],
        dimension_numbers=("NCH", "OIH", "NCH"),
        precision=jax.lax.Precision.HIGHEST)
    if bias is not None:
        out = out + bias[None, :, None]
    return out


def semantic_encoder_ref(params, x):
    h0 = _conv1d_ref(x, params["initial_conv"]["w"], None)
    r = jnp.maximum(h0, 0.0)
    h1 = _conv1d_ref(r, params["res_conv1"]["w"], params["res_conv1"].get("b"))
    h2 = _conv1d_ref(jnp.maximum(h1, 0.0), params["res_conv2"]["w"],
                     params["res_conv2"].get("b")) + r
    return _conv1d_ref(h2, params["final_conv"]["w"], None)


# ----------------------------------------------------------------------------
# Demo
# ----------------------------------------------------------------------------
if __name__ == "__main__":
    cfg = dict(input_channels=32, output_channels=16, encode_channels=32,
               kernel_size=3, bias=True)
    B, L = 2, 300

    key = jax.random.PRNGKey(0)
    pkey, xkey = jax.random.split(key)
    params = init_semantic_encoder_params(pkey, **cfg)
    x = jax.random.normal(xkey, (B, cfg["input_channels"], L), jnp.float32)

    ref = semantic_encoder_ref(params, x)

    # Multi-tile f32 MXU path: exercises the left-halo carry, the clamped next-block
    # right halo, and the [0, L) edge masking (L = 300 does not divide TL = 128).
    fwd_f32 = jax.jit(functools.partial(semantic_encoder_forward,
                                        block_l=128, mm_dtype=jnp.float32))
    out_f32 = jax.block_until_ready(fwd_f32(params, x))
    assert out_f32.shape == (B, cfg["output_channels"], L), out_f32.shape
    assert bool(jnp.allclose(out_f32, ref, rtol=2e-2, atol=2e-2)), \
        float(jnp.max(jnp.abs(out_f32 - ref)))

    # Single-tile bf16 MXU path at the default (production-style) tile size.
    fwd_bf16 = jax.jit(functools.partial(semantic_encoder_forward,
                                         block_l=512, mm_dtype=jnp.bfloat16))
    out_bf16 = jax.block_until_ready(fwd_bf16(params, x))
    assert out_bf16.shape == (B, cfg["output_channels"], L), out_bf16.shape
    assert bool(jnp.all(jnp.isfinite(out_bf16)))
    assert bool(jnp.allclose(out_bf16, ref, rtol=5e-2, atol=5e-2)), \
        float(jnp.max(jnp.abs(out_bf16 - ref)))

    print("KERNEL_OK")
</pallas_src>

<mosaic_0001>
module attributes {stable_mosaic.version = 11 : i64} {
  func.func @kernel(%arg0: i32, %arg1: i32, %arg2: memref<1x32x128xf32, #tpu.memory_space<vmem>>, %arg3: memref<1x32x128xf32, #tpu.memory_space<vmem>>, %arg4: memref<32x96xf32, #tpu.memory_space<vmem>>, %arg5: memref<32x96xf32, #tpu.memory_space<vmem>>, %arg6: memref<32x96xf32, #tpu.memory_space<vmem>>, %arg7: memref<16x96xf32, #tpu.memory_space<vmem>>, %arg8: memref<32x1xf32, #tpu.memory_space<vmem>>, %arg9: memref<32x1xf32, #tpu.memory_space<vmem>>, %arg10: memref<1x16x128xf32, #tpu.memory_space<vmem>>, %arg11: memref<32x128xf32, #tpu.memory_space<vmem>>) attributes {dimension_semantics = [#tpu.dimension_semantics<parallel>, #tpu.dimension_semantics<arbitrary>], iteration_bounds = array<i64: 2, 3>, scalar_prefetch = 0 : i64, scratch_operands = 1 : i64, tpu.core_type = #tpu.core_type<tc>, window_params = [{transform_indices = @transform_0, window_bounds = array<i64: 1, 32, 128>}, {transform_indices = @transform_1, window_bounds = array<i64: 1, 32, 128>}, {pipeline_mode = #tpu.pipeline_mode<synchronous>, transform_indices = @transform_2, window_bounds = array<i64: 32, 96>}, {pipeline_mode = #tpu.pipeline_mode<synchronous>, transform_indices = @transform_3, window_bounds = array<i64: 32, 96>}, {pipeline_mode = #tpu.pipeline_mode<synchronous>, transform_indices = @transform_4, window_bounds = array<i64: 32, 96>}, {pipeline_mode = #tpu.pipeline_mode<synchronous>, transform_indices = @transform_5, window_bounds = array<i64: 16, 96>}, {pipeline_mode = #tpu.pipeline_mode<synchronous>, transform_indices = @transform_6, window_bounds = array<i64: 32, 1>}, {pipeline_mode = #tpu.pipeline_mode<synchronous>, transform_indices = @transform_7, window_bounds = array<i64: 32, 1>}, {transform_indices = @transform_8, window_bounds = array<i64: 1, 16, 128>}]} {
    %c128_i32 = arith.constant 128 : i32
    %0 = arith.muli %arg1, %c128_i32 : i32
    %c4_i32 = arith.constant 4 : i32
    %1 = arith.subi %0, %c4_i32 : i32
    %c0 = arith.constant 0 : index
    %c0_0 = arith.constant 0 : index
    %c0_1 = arith.constant 0 : index
    %2 = vector.load %arg2[%c0, %c0_0, %c0_1] : memref<1x32x128xf32, #tpu.memory_space<vmem>>, vector<1x32x128xf32>
    %3 = vector.shape_cast %2 : vector<1x32x128xf32> to vector<32x128xf32>
    %c0_i32 = arith.constant 0 : i32
    %4 = arith.cmpi eq, %arg1, %c0_i32 : i32
    %5 = arith.extui %4 : i1 to i32
    %c0_i32_2 = arith.constant 0 : i32
    %6 = arith.cmpi ne, %5, %c0_i32_2 : i32
    scf.if %6 {
      %cst_41 = arith.constant 0.000000e+00 : f32
      %103 = vector.broadcast %cst_41 : f32 to vector<32x128xf32>
      %c0_42 = arith.constant 0 : index
      %c0_43 = arith.constant 0 : index
      %104 = vector.load %arg11[%c0_42, %c0_43] : memref<32x128xf32, #tpu.memory_space<vmem>>, vector<32x128xf32>
      tpu.vector_store %arg11[%c0_42, %c0_43], %103 {strides = array<i32>} : memref<32x128xf32, #tpu.memory_space<vmem>>, vector<32x128xf32>,
    } else {
    }
    %c0_3 = arith.constant 0 : index
    %c0_4 = arith.constant 0 : index
    %7 = vector.load %arg11[%c0_3, %c0_4] : memref<32x128xf32, #tpu.memory_space<vmem>>, vector<32x128xf32>
    %c0_5 = arith.constant 0 : index
    %c0_6 = arith.constant 0 : index
    %c0_7 = arith.constant 0 : index
    %8 = vector.load %arg3[%c0_5, %c0_6, %c0_7] : memref<1x32x128xf32, #tpu.memory_space<vmem>>, vector<1x32x128xf32>
    %9 = vector.shape_cast %8 : vector<1x32x128xf32> to vector<32x128xf32>
    %10 = tpu.concatenate %7, %3, %9 in 1 : vector<32x128xf32>, vector<32x128xf32>, vector<32x128xf32> -> vector<32x384xf32>
    %11 = vector.extract_strided_slice %10 {offsets = [0, 124], sizes = [32, 136], strides = [1, 1]} : vector<32x384xf32> to vector<32x136xf32>
    %c0_8 = arith.constant 0 : index
    %c0_9 = arith.constant 0 : index
    %12 = vector.load %arg11[%c0_8, %c0_9] : memref<32x128xf32, #tpu.memory_space<vmem>>, vector<32x128xf32>
    tpu.vector_store %arg11[%c0_8, %c0_9], %3 {strides = array<i32>} : memref<32x128xf32, #tpu.memory_space<vmem>>, vector<32x128xf32>,
    %13 = tpu.iota {dimensions = array<i32: 1>} : vector<1x136xi32>
    %14 = vector.broadcast %1 : i32 to vector<1x136xi32>
    %15 = arith.addi %14, %13 : vector<1x136xi32>
    %c0_i32_10 = arith.constant 0 : i32
    %16 = vector.broadcast %c0_i32_10 : i32 to vector<1x136xi32>
    %17 = arith.cmpi sge, %15, %16 : vector<1x136xi32>
    %c300_i32 = arith.constant 300 : i32
    %18 = vector.broadcast %c300_i32 : i32 to vector<1x136xi32>
    %19 = arith.cmpi slt, %15, %18 : vector<1x136xi32>
    %20 = arith.andi %17, %19 : vector<1x136xi1>
    %cst = arith.constant 0.000000e+00 : f32
    %21 = vector.shape_cast %20 : vector<1x136xi1> to vector<1x136xi1>
    %22 = vector.broadcast %21 : vector<1x136xi1> to vector<32x136xi1>
    %23 = vector.broadcast %cst : f32 to vector<32x136xf32>
    %24 = arith.select %22, %11, %23 : vector<32x136xi1>, vector<32x136xf32>
    %25 = vector.extract_strided_slice %24 {offsets = [0, 0], sizes = [32, 134], strides = [1, 1]} : vector<32x136xf32> to vector<32x134xf32>
    %26 = vector.extract_strided_slice %24 {offsets = [0, 1], sizes = [32, 134], strides = [1, 1]} : vector<32x136xf32> to vector<32x134xf32>
    %27 = vector.extract_strided_slice %24 {offsets = [0, 2], sizes = [32, 134], strides = [1, 1]} : vector<32x136xf32> to vector<32x134xf32>
    %28 = tpu.concatenate %25, %26, %27 in 0 : vector<32x134xf32>, vector<32x134xf32>, vector<32x134xf32> -> vector<96x134xf32>
    %c0_11 = arith.constant 0 : index
    %c0_12 = arith.constant 0 : index
    %29 = vector.load %arg4[%c0_11, %c0_12] : memref<32x96xf32, #tpu.memory_space<vmem>>, vector<32x96xf32>
    %cst_13 = arith.constant dense<0.000000e+00> : vector<32x134xf32>
    %30 = tpu.matmul %29, %28, %cst_13 {dimension_numbers = #tpu.dot_dimension_numbers<[1], [0], [0], [1], [0, 0, 1, 1], [], []>} : vector<32x96xf32>, vector<96x134xf32>, vector<32x134xf32> -> vector<32x134xf32>
    %cst_14 = arith.constant 0.000000e+00 : f32
    %31 = vector.broadcast %cst_14 : f32 to vector<32x134xf32>
    %32 = arith.maximumf %30, %31 : vector<32x134xf32>
    %c1_i32 = arith.constant 1 : i32
    %33 = arith.addi %1, %c1_i32 : i32
    %34 = tpu.iota {dimensions = array<i32: 1>} : vector<1x134xi32>
    %35 = vector.broadcast %33 : i32 to vector<1x134xi32>
    %36 = arith.addi %35, %34 : vector<1x134xi32>
    %c0_i32_15 = arith.constant 0 : i32
    %37 = vector.broadcast %c0_i32_15 : i32 to vector<1x134xi32>
    %38 = arith.cmpi sge, %36, %37 : vector<1x134xi32>
    %c300_i32_16 = arith.constant 300 : i32
    %39 = vector.broadcast %c300_i32_16 : i32 to vector<1x134xi32>
    %40 = arith.cmpi slt, %36, %39 : vector<1x134xi32>
    %41 = arith.andi %38, %40 : vector<1x134xi1>
    %cst_17 = arith.constant 0.000000e+00 : f32
    %42 = vector.shape_cast %41 : vector<1x134xi1> to vector<1x134xi1>
    %43 = vector.broadcast %42 : vector<1x134xi1> to vector<32x134xi1>
    %44 = vector.broadcast %cst_17 : f32 to vector<32x134xf32>
    %45 = arith.select %43, %32, %44 : vector<32x134xi1>, vector<32x134xf32>
    %46 = vector.extract_strided_slice %45 {offsets = [0, 0], sizes = [32, 132], strides = [1, 1]} : vector<32x134xf32> to vector<32x132xf32>
    %47 = vector.extract_strided_slice %45 {offsets = [0, 1], sizes = [32, 132], strides = [1, 1]} : vector<32x134xf32> to vector<32x132xf32>
    %48 = vector.extract_strided_slice %45 {offsets = [0, 2], sizes = [32, 132], strides = [1, 1]} : vector<32x134xf32> to vector<32x132xf32>
    %49 = tpu.concatenate %46, %47, %48 in 0 : vector<32x132xf32>, vector<32x132xf32>, vector<32x132xf32> -> vector<96x132xf32>
    %c0_18 = arith.constant 0 : index
    %c0_19 = arith.constant 0 : index
    %50 = vector.load %arg5[%c0_18, %c0_19] : memref<32x96xf32, #tpu.memory_space<vmem>>, vector<32x96xf32>
    %cst_20 = arith.constant dense<0.000000e+00> : vector<32x132xf32>
    %51 = tpu.matmul %50, %49, %cst_20 {dimension_numbers = #tpu.dot_dimension_numbers<[1], [0], [0], [1], [0, 0, 1, 1], [], []>} : vector<32x96xf32>, vector<96x132xf32>, vector<32x132xf32> -> vector<32x132xf32>
    %c0_21 = arith.constant 0 : index
    %c0_22 = arith.constant 0 : index
    %52 = vector.load %arg8[%c0_21, %c0_22] : memref<32x1xf32, #tpu.memory_space<vmem>>, vector<32x1xf32>
    %53 = vector.broadcast %52 : vector<32x1xf32> to vector<32x132xf32>
    %54 = arith.addf %51, %53 : vector<32x132xf32>
    %cst_23 = arith.constant 0.000000e+00 : f32
    %55 = vector.broadcast %cst_23 : f32 to vector<32x132xf32>
    %56 = arith.maximumf %54, %55 : vector<32x132xf32>
    %c2_i32 = arith.constant 2 : i32
    %57 = arith.addi %1, %c2_i32 : i32
    %58 = tpu.iota {dimensions = array<i32: 1>} : vector<1x132xi32>
    %59 = vector.broadcast %57 : i32 to vector<1x132xi32>
    %60 = arith.addi %59, %58 : vector<1x132xi32>
    %c0_i32_24 = arith.constant 0 : i32
    %61 = vector.broadcast %c0_i32_24 : i32 to vector<1x132xi32>
    %62 = arith.cmpi sge, %60, %61 : vector<1x132xi32>
    %c300_i32_25 = arith.constant 300 : i32
    %63 = vector.broadcast %c300_i32_25 : i32 to vector<1x132xi32>
    %64 = arith.cmpi slt, %60, %63 : vector<1x132xi32>
    %65 = arith.andi %62, %64 : vector<1x132xi1>
    %cst_26 = arith.constant 0.000000e+00 : f32
    %66 = vector.shape_cast %65 : vector<1x132xi1> to vector<1x132xi1>
    %67 = vector.broadcast %66 : vector<1x132xi1> to vector<32x132xi1>
    %68 = vector.broadcast %cst_26 : f32 to vector<32x132xf32>
    %69 = arith.select %67, %56, %68 : vector<32x132xi1>, vector<32x132xf32>
    %70 = vector.extract_strided_slice %69 {offsets = [0, 0], sizes = [32, 130], strides = [1, 1]} : vector<32x132xf32> to vector<32x130xf32>
    %71 = vector.extract_strided_slice %69 {offsets = [0, 1], sizes = [32, 130], strides = [1, 1]} : vector<32x132xf32> to vector<32x130xf32>
    %72 = vector.extract_strided_slice %69 {offsets = [0, 2], sizes = [32, 130], strides = [1, 1]} : vector<32x132xf32> to vector<32x130xf32>
    %73 = tpu.concatenate %70, %71, %72 in 0 : vector<32x130xf32>, vector<32x130xf32>, vector<32x130xf32> -> vector<96x130xf32>
    %c0_27 = arith.constant 0 : index
    %c0_28 = arith.constant 0 : index
    %74 = vector.load %arg6[%c0_27, %c0_28] : memref<32x96xf32, #tpu.memory_space<vmem>>, vector<32x96xf32>
    %cst_29 = arith.constant dense<0.000000e+00> : vector<32x130xf32>
    %75 = tpu.matmul %74, %73, %cst_29 {dimension_numbers = #tpu.dot_dimension_numbers<[1], [0], [0], [1], [0, 0, 1, 1], [], []>} : vector<32x96xf32>, vector<96x130xf32>, vector<32x130xf32> -> vector<32x130xf32>
    %c0_30 = arith.constant 0 : index
    %c0_31 = arith.constant 0 : index
    %76 = vector.load %arg9[%c0_30, %c0_31] : memref<32x1xf32, #tpu.memory_space<vmem>>, vector<32x1xf32>
    %77 = vector.broadcast %76 : vector<32x1xf32> to vector<32x130xf32>
    %78 = arith.addf %75, %77 : vector<32x130xf32>
    %79 = vector.extract_strided_slice %45 {offsets = [0, 2], sizes = [32, 130], strides = [1, 1]} : vector<32x134xf32> to vector<32x130xf32>
    %80 = arith.addf %78, %79 : vector<32x130xf32>
    %c3_i32 = arith.constant 3 : i32
    %81 = arith.addi %1, %c3_i32 : i32
    %82 = tpu.iota {dimensions = array<i32: 1>} : vector<1x130xi32>
    %83 = vector.broadcast %81 : i32 to vector<1x130xi32>
    %84 = arith.addi %83, %82 : vector<1x130xi32>
    %c0_i32_32 = arith.constant 0 : i32
    %85 = vector.broadcast %c0_i32_32 : i32 to vector<1x130xi32>
    %86 = arith.cmpi sge, %84, %85 : vector<1x130xi32>
    %c300_i32_33 = arith.constant 300 : i32
    %87 = vector.broadcast %c300_i32_33 : i32 to vector<1x130xi32>
    %88 = arith.cmpi slt, %84, %87 : vector<1x130xi32>
    %89 = arith.andi %86, %88 : vector<1x130xi1>
    %cst_34 = arith.constant 0.000000e+00 : f32
    %90 = vector.shape_cast %89 : vector<1x130xi1> to vector<1x130xi1>
    %91 = vector.broadcast %90 : vector<1x130xi1> to vector<32x130xi1>
    %92 = vector.broadcast %cst_34 : f32 to vector<32x130xf32>
    %93 = arith.select %91, %80, %92 : vector<32x130xi1>, vector<32x130xf32>
    %94 = vector.extract_strided_slice %93 {offsets = [0, 0], sizes = [32, 128], strides = [1, 1]} : vector<32x130xf32> to vector<32x128xf32>
    %95 = vector.extract_strided_slice %93 {offsets = [0, 1], sizes = [32, 128], strides = [1, 1]} : vector<32x130xf32> to vector<32x128xf32>
    %96 = vector.extract_strided_slice %93 {offsets = [0, 2], sizes = [32, 128], strides = [1, 1]} : vector<32x130xf32> to vector<32x128xf32>
    %97 = tpu.concatenate %94, %95, %96 in 0 : vector<32x128xf32>, vector<32x128xf32>, vector<32x128xf32> -> vector<96x128xf32>
    %c0_35 = arith.constant 0 : index
    %c0_36 = arith.constant 0 : index
    %98 = vector.load %arg7[%c0_35, %c0_36] : memref<16x96xf32, #tpu.memory_space<vmem>>, vector<16x96xf32>
    %cst_37 = arith.constant dense<0.000000e+00> : vector<16x128xf32>
    %99 = tpu.matmul %98, %97, %cst_37 {dimension_numbers = #tpu.dot_dimension_numbers<[1], [0], [0], [1], [0, 0, 1, 1], [], []>} : vector<16x96xf32>, vector<96x128xf32>, vector<16x128xf32> -> vector<16x128xf32>
    %c0_38 = arith.constant 0 : index
    %c0_39 = arith.constant 0 : index
    %c0_40 = arith.constant 0 : index
    %100 = vector.load %arg10[%c0_38, %c0_39, %c0_40] : memref<1x16x128xf32, #tpu.memory_space<vmem>>, vector<1x16x128xf32>
    %101 = vector.shape_cast %100 : vector<1x16x128xf32> to vector<16x128xf32>
    %102 = vector.shape_cast %99 : vector<16x128xf32> to vector<1x16x128xf32>
    tpu.vector_store %arg10[%c0_38, %c0_39, %c0_40], %102 {strides = array<i32>} : memref<1x16x128xf32, #tpu.memory_space<vmem>>, vector<1x16x128xf32>,
    return
  }
  func.func @transform_0(%arg0: i32, %arg1: i32) -> (i32, i32, i32) {
    %c0_i32 = arith.constant 0 : i32
    %c0_i32_0 = arith.constant 0 : i32
    return %arg0, %c0_i32, %arg1 : i32, i32, i32
  }
  func.func @transform_1(%arg0: i32, %arg1: i32) -> (i32, i32, i32) {
    %c1_i32 = arith.constant 1 : i32
    %0 = arith.addi %arg1, %c1_i32 : i32
    %c1_i32_0 = arith.constant 1 : i32
    %1 = arith.muli %0, %c1_i32_0 : i32
    %c2_i32 = arith.constant 2 : i32
    %2 = arith.minsi %1, %c2_i32 : i32
    %c0_i32 = arith.constant 0 : i32
    %c0_i32_1 = arith.constant 0 : i32
    return %arg0, %c0_i32, %2 : i32, i32, i32
  }
  func.func @transform_2(%arg0: i32, %arg1: i32) -> (i32, i32) {
    %c0_i32 = arith.constant 0 : i32
    %c0_i32_0 = arith.constant 0 : i32
    %c0_i32_1 = arith.constant 0 : i32
    return %c0_i32, %c0_i32_0 : i32, i32
  }
  func.func @transform_3(%arg0: i32, %arg1: i32) -> (i32, i32) {
    %c0_i32 = arith.constant 0 : i32
    %c0_i32_0 = arith.constant 0 : i32
    %c0_i32_1 = arith.constant 0 : i32
    return %c0_i32, %c0_i32_0 : i32, i32
  }
  func.func @transform_4(%arg0: i32, %arg1: i32) -> (i32, i32) {
    %c0_i32 = arith.constant 0 : i32
    %c0_i32_0 = arith.constant 0 : i32
    %c0_i32_1 = arith.constant 0 : i32
    return %c0_i32, %c0_i32_0 : i32, i32
  }
  func.func @transform_5(%arg0: i32, %arg1: i32) -> (i32, i32) {
    %c0_i32 = arith.constant 0 : i32
    %c0_i32_0 = arith.constant 0 : i32
    %c0_i32_1 = arith.constant 0 : i32
    return %c0_i32, %c0_i32_0 : i32, i32
  }
  func.func @transform_6(%arg0: i32, %arg1: i32) -> (i32, i32) {
    %c0_i32 = arith.constant 0 : i32
    %c0_i32_0 = arith.constant 0 : i32
    %c0_i32_1 = arith.constant 0 : i32
    return %c0_i32, %c0_i32_0 : i32, i32
  }
  func.func @transform_7(%arg0: i32, %arg1: i32) -> (i32, i32) {
    %c0_i32 = arith.constant 0 : i32
    %c0_i32_0 = arith.constant 0 : i32
    %c0_i32_1 = arith.constant 0 : i32
    return %c0_i32, %c0_i32_0 : i32, i32
  }
  func.func @transform_8(%arg0: i32, %arg1: i32) -> (i32, i32, i32) {
    %c0_i32 = arith.constant 0 : i32
    %c0_i32_0 = arith.constant 0 : i32
    return %arg0, %c0_i32, %arg1 : i32, i32, i32
  }
}

</mosaic_0001>

<bundles_post_ra>
// kernel: semantic_encoder_forward.1
= control target key start
LH: loop header
LB: loop body
LE: loop exit
PB: predicated region body
PF: predicated region fallthrough
CT: control target
= control target key end

     0   :  { %s2735_s0 = inlined_call_operand.vmem [shape: f32[2,32,300], index: 0, kind: input, shape index: {}, may-alias: {0,1}]   ;;  %s2736_s1 = inlined_call_operand.vmem [shape: f32[2,32,300], index: 1, kind: input, shape index: {}, may-alias: {0,1}]   ;;  %s2737_s2 = inlined_call_operand.vmem [shape: f32[32,96], index: 2, kind: input, shape index: {}]   ;;  %s2738_s3 = inlined_call_operand.vmem [shape: f32[32,96], index: 3, kind: input, shape index: {}]   ;;  %s2739_s4 = inlined_call_operand.vmem [shape: f32[32,96], index: 4, kind: input, shape index: {}]   ;;  %s2740_s5 = inlined_call_operand.vmem [shape: f32[16,96], index: 5, kind: input, shape index: {}]   ;;  %s2741_s6 = inlined_call_operand.vmem [shape: f32[32,1], index: 6, kind: input, shape index: {}]   ;;  %s2742_s7 = inlined_call_operand.vmem [shape: f32[32,1], index: 7, kind: input, shape index: {}]   ;;  %s2743_s8 = inlined_call_operand.hbm [shape: f32[2,16,300], index: 8, kind: output, shape index: {}]  }
   0x1   :  { %2748 = sst [smem:[#allocation12_spill]] %s2735_s0 }
   0x2   :  { %2749 = sst [smem:[#allocation13_spill]] %s2740_s5 }
   0x3   :  { %2750 = sst [smem:[#allocation14_spill]] %s2743_s8 }
   0x4   :  { %13 = vsyncpa [#allocation6], 0 }
   0x5   :  { %15 = vsyncpa [#allocation6 + $0x1], 0  ;;  %s2112_s27 = smov 0   ;;  %s2114_s28 = smov 0  }
   0x6   :  { %s2116_s29 = smov 0   ;;  %s2118_s30 = smov 0  }
   0x7   :  { %s2120_s9 = smov 0   ;;  %s2122_s10 = smov 0  }
   0x8   :  { %s2124_s11 = smov 0   ;;  %s2126_s12 = smov 0  }
   0x9   :  { %s2128_s13 = smov 0   ;;  %s2130_s14 = smov 0  }
   0xa LB: > { %2751 = sst [smem:[#allocation8_spill]] %s2043_s11  ;;  %s1460_s15 = sadd.s32 4294967295, %s2055_s14   ;;  %s2055_s14 = sphi %s2130_s14, %s21_s14   ;;  %s2051_s13 = sphi %s2128_s13, %s2793_s13   ;;  %s2047_s12 = sphi %s2126_s12, %s2792_s12   ;;  %s2043_s11 = sphi %s2124_s11, %s2791_s11   ;;  %s2039_s10 = sphi %s2122_s10, %s2790_s10   ;;  %s2035_s9 = sphi %s2120_s9, %s2789_s9   ;;  %s2031_s30 = sphi %s2118_s30, %s2788_s30   ;;  %s2027_s29 = sphi %s2116_s29, %s2787_s29   ;;  %s2023_s28 = sphi %s2114_s28, %s2786_s28   ;;  %s2019_s27 = sphi %s2112_s27, %s2785_s27  }
   0xb   : > { %s30_s17 = sadd.s32 1, %s2047_s12  ;;  %s33_s18 = sadd.s32 1, %s2051_s13 }
   0xc   : > { %p31_p0 = scmp.ge.s32.totalorder %s30_s17, 3  ;;  %s42_s19 = sadd.s32 1, %s2035_s9 }
   0xd   : > { %p49_p1 = scmp.ne.s32.totalorder %s2035_s9, %s2031_s30  ;;  %p50_p2 = scmp.eq.s32.totalorder %s2055_s14, 0 }
   0xe   : > { %s2170_s20 = scalar_select %p31_p0, 0, %s30_s17  }
   0xf   : > { %s2795_s18 = smov (!%p31_p0, %s33_s18), %s2051_s13  ;;  %p2180_p3 = por %p50_p2, %p49_p1 }
  0x10   : > { %2752 = sst [smem:[#allocation9_spill]] %s2170_s20  ;;  %s38_s21 = ssub.s32 %s2047_s12, %s2170_s20 }
  0x11   : > { %p35_p4 = scmp.ge.s32.totalorder %s2795_s18, 2  ;;  %p66_p5 = scmp.lt.s32.totalorder %s30_s17, 2 }
  0x12   : > { %s68_s23 = sadd.s32 1, %s2170_s20  ;;  %s76_s24 = sadd.s32 1, %s2027_s29 }
  0x13   : > { %s2797_s18 = smov (%p35_p4, %s2795_s18), 0  ;;  %s2799_s17 = smov (!%p66_p5, %s30_s17), 2 }
  0x14   : > { %2754 = sst [smem:[#allocation10_spill]] %s2797_s18  ;;  %s37_s25 = ssub.s32 %s2051_s13, %s2797_s18 }
  0x15   : > { %p69_p6 = scmp.lt.s32.totalorder %s68_s23, 2  ;;  %s39_s26 = sor.u32 %s38_s21, %s37_s25 }
  0x16   : > { %p83_p7 = scmp.ne.s32.totalorder %s2027_s29, %s2023_s28  ;;  %p40_p8 = scmp.eq.s32.totalorder %s39_s26, 0 }
  0x17   : > { %p241_p9 = scmp.eq.s32.totalorder %s1460_s15, 5  ;;  %s2801_s23 = smov (!%p69_p6, %s68_s23), 2 }
  0x18   : > { %s2195_s16 = scalar_select %p40_p8, %s2035_s9, %s42_s19  }
  0x19   : > { %s72_s20 = ssub.s32 %s2799_s17, %s2801_s23  ;;  %p2200_p10 = por %p83_p7, %p50_p2 }
  0x1a   : > { %2755 = sst [smem:[#allocation11_spill]] %s2195_s16  ;;  %s73_s11 = sor.u32 %s72_s20, %s37_s25 }
  0x1b   : > { %p2207_p11 = por %p241_p9, %p49_p1  ;;  %p74_p12 = scmp.eq.s32.totalorder %s73_s11, 0 }
  0x1c   : > { %p246_p13 = scmp.ne.s32.totalorder %s2031_s30, %s2019_s27  ;;  %s2758_s21 = sadd.s32 4294967294, %s2055_s14  }
  0x1d   : > { %p247_p0 = scmp.eq.s32.totalorder %s2758_s21, 5  ;;  %p1463_p2 = scmp.ge.s32.totalorder %s2055_s14, 6 }
  0x1e   : > { %s2216_s15 = scalar_select %p74_p12, %s2027_s29, %s76_s24  }
  0x1f   : > { %p2218_p4 = por %p247_p0, %p246_p13  ;;  %281 = sbr.rel (%p1463_p2) target bundleno = 59 (0x3b), region = 40 }
  0x26   : > { %284 = sbr.rel (!%p2180_p3) target bundleno = 50 (0x32), region = 44  ;;  %s286_s20 = sand.u32 (%p2180_p3), 1, %s2035_s9  }
  0x27   : > { %s1674_s11 = smul.u32 (%p2180_p3), 12, %s2051_s13  ;;  %s1464_s23 = sshll.u32 (%p2180_p3), %s286_s20, 5 }
  0x28   : > { %s2760_s0 = sld [smem:[#allocation12_spill]] (%p2180_p3)  ;;  %s288_s16 = scalar_lea.vmem (%p2180_p3), [#allocation3], %s1464_s23 }
  0x29   : > { %s290_s25 = sadd.s32 (%p2180_p3), %s2047_s12, %s1674_s11 }
  0x2a   : > { %s1465_s26 = sshll.u32 (%p2180_p3), %s290_s25, 3 }
  0x2e   : > { %s292_s18 = scalar_lea.vmem %s2760_s0, %s1465_s26 }
  0x2f   : > { %v326_v0 = vld [vmem:[%s292_s18] sm:$0xff]  ;;  %v328_v1 = vld [vmem:[%s292_s18 + $0x18] sm:$0xff]  ;;  %v330_v2 = vld [vmem:[%s292_s18 + $0x30] sm:$0xff] }
  0x30   : > { %327 = vst [vmem:[%s288_s16] sm:$0xff] %v326_v0  ;;  %329 = vst [vmem:[%s288_s16 + $0x8] sm:$0xff] %v328_v1  ;;  %v332_v3 = vld [vmem:[%s292_s18 + $0x48] sm:$0xff] }
  0x31   : > { %331 = vst [vmem:[%s288_s16 + $0x10] sm:$0xff] %v330_v2  ;;  %333 = vst [vmem:[%s288_s16 + $0x18] sm:$0xff] %v332_v3 }
  0x32 PF: > { %339 = sbr.rel (!%p2200_p10) target bundleno = 59 (0x3b), region = 82  ;;  %s341_s22 = sand.u32 (%p2200_p10), 1, %s2027_s29  }
  0x33   : > { %s1675_s20 = smul.u32 (%p2200_p10), 12, %s2051_s13  ;;  %s1466_s11 = sshll.u32 (%p2200_p10), %s341_s22, 5 }
  0x34   : > { %s343_s16 = scalar_lea.vmem (%p2200_p10), [#allocation4], %s1466_s11 }
  0x35   : > { %s348_s25 = sadd.s32 (%p2200_p10), %s1675_s20, %s2799_s17 }
  0x36   : > { %s1467_s26 = sshll.u32 (%p2200_p10), %s348_s25, 3 }
  0x37   : > { %s350_s23 = scalar_lea.vmem (%p2200_p10), %s2736_s1, %s1467_s26 }
  0x38   : > { %v384_v4 = vld [vmem:[%s350_s23] sm:$0xff] (%p2200_p10)  ;;  %v386_v5 = vld [vmem:[%s350_s23 + $0x18] sm:$0xff] (%p2200_p10)  ;;  %v388_v6 = vld [vmem:[%s350_s23 + $0x30] sm:$0xff] (%p2200_p10) }
  0x39   : > { %385 = vst [vmem:[%s343_s16] sm:$0xff] %v384_v4  ;;  %387 = vst [vmem:[%s343_s16 + $0x8] sm:$0xff] %v386_v5  ;;  %v390_v7 = vld [vmem:[%s350_s23 + $0x48] sm:$0xff] }
  0x3a   : > { %389 = vst [vmem:[%s343_s16 + $0x10] sm:$0xff] %v388_v6  ;;  %391 = vst [vmem:[%s343_s16 + $0x18] sm:$0xff] %v390_v7 }
  0x3b PF: > { %p1468_p1 = scmp.ge.s32.totalorder %s2055_s14, 1  ;;  %p396_p3 = scmp.lt.s32.totalorder %s2055_s14, 7 }
  0x3d   : > { %p397_p5 = pnand %p1468_p1, %p396_p3 }
  0x3e   : > { %s2242_s8 = sand.u32 (!%p397_p5), 1, %s2031_s30   ;;  %s410_s17 = sand.u32 (!%p397_p5), 1, %s2023_s28  }
  0x3f   : > { %400 = sbr.rel (%p397_p5) target bundleno = 1659 (0x67b), region = 120  ;;  %s1469_s18 = sshll.u32 (!%p397_p5), %s2242_s8, 5 }
  0x40   : > { %s1470_s22 = sshll.u32 (!%p397_p5), %s410_s17, 5  ;;  %s1471_s20 = sshll.u32 (!%p397_p5), %s2242_s8, 4 }
  0x41   : > { %s2248_s11 = sshll.u32 (!%p397_p5), %s2039_s10, 7  ;;  %s405_s25 = scalar_lea.vmem (!%p397_p5), [#allocation3], %s1469_s18 }
  0x42   : > { %v452_v8 = vld [vmem:[%s405_s25] sm:$0xff] (!%p397_p5)  ;;  %v453_v9 = vld [vmem:[%s405_s25 + $0x8] sm:$0xff] (!%p397_p5)  ;;  %v454_v10 = vld [vmem:[%s405_s25 + $0x10] sm:$0xff] (!%p397_p5)  ;;  %s1473_s26 = sadd.s32 (!%p397_p5), 4294967292, %s2248_s11  ;;  %s412_s24 = scalar_lea.vmem (!%p397_p5), [#allocation4], %s1470_s22 }
  0x43   : > { %v455_v11 = vld [vmem:[%s405_s25 + $0x18] sm:$0xff] (!%p397_p5)  ;;  %s2251_s21 = scalar_lea.vmem (!%p397_p5), [#allocation5], %s1471_s20  ;;  %p1474_p6 = scmp.ne.s32.totalorder (!%p397_p5), %s2039_s10, 0 }
  0x46   : > { %459 = sbr.rel (%p1474_p6) target bundleno = 77 (0x4d), region = 132  ;;  %v2057_v12 = vmov (!%p1474_p6), 0.0  }
  0x47   : > { %460 = vst [vmem:[#allocation2] sm:$0xff] (!%p1474_p6), %v2057_v12  ;;  %461 = vst [vmem:[#allocation2 + $0x8] sm:$0xff] (!%p1474_p6), %v2057_v12 }
  0x48   : > { %462 = vst [vmem:[#allocation2 + $0x10] sm:$0xff] (!%p1474_p6), %v2057_v12  ;;  %463 = vst [vmem:[#allocation2 + $0x18] sm:$0xff] (!%p1474_p6), %v2057_v12 }
  0x4d PF: > { %v469_v13 = vld [vmem:[%s412_s24 + $0x8] sm:$0xff]  ;;  %v468_v19 = vld [vmem:[%s412_s24] sm:$0xff]  ;;  %s2058_s28 = smov 4   ;;  %v471_v23 = vld [vmem:[%s412_s24 + $0x18] sm:$0xff]  ;;  %v476_v27 = vlaneseq  ;;  %v479_v30 = vstv %s1473_s26  ;;  %vm528_vm0 = vcmask 31744   ;;  %s2059_s23 = smov 127  }
  0x4e   : > { %v464_v14 = vld [vmem:[#allocation2] sm:$0xff]  ;;  %v1783_v16 = vpack.i.bf16 %v469_v13, %v453_v9  ;;  %v465_v18 = vld [vmem:[#allocation2 + $0x8] sm:$0xff]  ;;  %v470_v24 = vld [vmem:[%s412_s24 + $0x10] sm:$0xff]  ;;  %v1798_v25 = vpack.i.bf16 %v471_v23, %v455_v11  ;;  %v2060_v13 = vmov 0.0   ;;  %s2061_s16 = smov 126   ;;  %vm577_vm9 = vcmask 1039360  }
  0x4f   : > { %v466_v15 = vld [vmem:[#allocation2 + $0x10] sm:$0xff]  ;;  %v1773_v17 = vpack.i.bf16 %v452_v8, %v464_v14  ;;  %472 = vst [vmem:[#allocation2] sm:$0xff] %v452_v8  ;;  %473 = vst [vmem:[#allocation2 + $0x8] sm:$0xff] %v453_v9  ;;  %v467_v20 = vld [vmem:[#allocation2 + $0x18] sm:$0xff]  ;;  %v1778_v22 = vpack.i.bf16 %v465_v18, %v468_v19  ;;  %v2254_v28 = vand.u32 127, %v476_v27  ;;  %700 = vmatprep.mubr.f32.mxu0 %v2060_v13  ;;  %923 = vmatprep.mubr.f32.mxu1 %v2060_v13  ;;  %vm606_vm10 = vcmask 1031168  }
  0x50   : > { %474 = vst [vmem:[#allocation2 + $0x10] sm:$0xff] %v454_v10  ;;  %1784 = vrot.lane.b32.xlu1 %v1783_v16, %s2058_s28  ;;  %v1788_v21 = vpack.i.bf16 %v454_v10, %v466_v15  ;;  %475 = vst [vmem:[#allocation2 + $0x18] sm:$0xff] %v455_v11  ;;  %v1793_v26 = vpack.i.bf16 %v467_v20, %v470_v24  ;;  %vm623_vm11 = vcmask 785408   ;;  %s733_s17 = sadd.s32 4294967293, %s2248_s11  ;;  %s956_s18 = sadd.s32 4294967294, %s2248_s11 }
  0x51   : > { %1774 = vrot.lane.b32.xlu0 %v1773_v17, %s2058_s28  ;;  %v2257_v29 = vadd.s32 128, %v2254_v28  ;;  %v480_v31 = vadd.s32 %v479_v30, %v2254_v28  ;;  %s1179_s22 = sadd.s32 4294967295, %s2248_s11  ;;  %s2779_s25 = sld [smem:[#allocation13_spill]] }
  0x52   : > { %s2781_s20 = sld [smem:[#allocation14_spill]] }
  0x53   : > { %v481_v32 = vadd.s32 %v479_v30, %v2257_v29  ;;  %vm482_vm3 = vcmp.ge.s32.totalorder %v480_v31, 0  ;;  %vm484_vm4 = vcmp.lt.s32.totalorder %v480_v31, 300 }
  0x54   : > { %1789 = vrot.lane.b32.xlu1 %v1788_v21, %s2058_s28  ;;  %vm2263_vm5 = vmand %vm482_vm3, %vm484_vm4 }
  0x55   : > { %1779 = vrot.lane.b32.xlu0 %v1778_v22, %s2058_s28  ;;  %vm483_vm1 = vcmp.ge.s32.totalorder %v481_v32, 0  ;;  %vm485_vm2 = vcmp.lt.s32.totalorder %v481_v32, 300  ;;  %vm1566_vm8 = vmpackc.low %vm2263_vm5, %vm2263_vm5 }
  0x56   : > { %vm2267_vm6 = vmand %vm483_vm1, %vm485_vm2 }
  0x57   : > { %vm1563_vm7 = vmpackc.low %vm2267_vm6, %vm2267_vm6 }
  0x58   : > { %1799 = vrot.lane.b32.xlu1 %v1798_v25, %s2058_s28 }
  0x59   : > { %1794 = vrot.lane.b32.xlu0 %v1793_v26, %s2058_s28 }
  0xc2   : > { %v1785_v33 = vpop.permute.xlu1 %1784 }
  0xc3   : > { %v1775_v34 = vpop.permute.xlu0 %1774  ;;  %v1787_v35 = vunpack.i.h.bf16 %v1785_v33  ;;  %v1786_v36 = vunpack.i.l.bf16 %v1785_v33 }
  0xc4   : > { %v1777_v37 = vunpack.i.h.bf16 %v1775_v34  ;;  %v1776_v38 = vunpack.i.l.bf16 %v1775_v34 }
  0xc5   : > { %v532_v43 = vsel %vm528_vm0, %v1786_v36, %v1787_v35 }
  0xc6   : > { %v1790_v40 = vpop.permute.xlu1 %1789  ;;  %v529_v44 = vsel %vm528_vm0, %v1776_v38, %v1777_v37  ;;  %v548_v50 = vsel %vm2267_vm6, %v532_v43, 0.0 }
  0xc7   : > { %v1780_v41 = vpop.permute.xlu0 %1779  ;;  %v1792_v47 = vunpack.i.h.bf16 %v1790_v40  ;;  %v1791_v48 = vunpack.i.l.bf16 %v1790_v40  ;;  %v545_v52 = vsel %vm2263_vm5, %v529_v44, 0.0 }
  0xc8   : > { %v1782_v45 = vunpack.i.h.bf16 %v1780_v41  ;;  %v1781_v46 = vunpack.i.l.bf16 %v1780_v41 }
  0xc9   : > { %v533_v63 = vsel %vm528_vm0, %v1791_v48, %v1792_v47 }
  0xca   : > { %v530_v49 = vsel %vm528_vm0, %v1777_v37, %v1781_v46  ;;  %v531_v51 = vsel %vm528_vm0, %v1782_v45, %v1786_v36  ;;  %v1800_v53 = vpop.permute.xlu1 %1799  ;;  %v549_v10 = vsel %vm2263_vm5, %v533_v63, 0.0 }
  0xcb   : > { %v1795_v54 = vpop.permute.xlu0 %1794  ;;  %v546_v55 = vsel %vm2267_vm6, %v530_v49, 0.0  ;;  %v1562_v56 = vpack.c.bf16 %v532_v43, %v530_v49  ;;  %v547_v57 = vsel %vm2263_vm5, %v531_v51, 0.0  ;;  %v1565_v58 = vpack.c.bf16 %v531_v51, %v529_v44 }
  0xcc   : > { %v1802_v59 = vunpack.i.h.bf16 %v1800_v53  ;;  %v1801_v60 = vunpack.i.l.bf16 %v1800_v53  ;;  %v1797_v61 = vunpack.i.h.bf16 %v1795_v54  ;;  %v1796_v62 = vunpack.i.l.bf16 %v1795_v54 }
  0xcd   : > { %1564 = vmatprep.subr.msk.bf16.mxu0 %vm1563_vm7, %v1562_v56  ;;  %v1808_v0 = vpack.i.bf16 %v548_v50, %v547_v57  ;;  %v1803_v1 = vpack.i.bf16 %v546_v55, %v545_v52  ;;  %v619_v56 = vld [vmem:[%s2737_s2] sm:$0xff]  ;;  %v620_v57 = vld [vmem:[%s2737_s2 + $0x8] sm:$0xff] }
  0xce   : > { %v536_v2 = vsel %vm528_vm0, %v1801_v60, %v1802_v59  ;;  %v534_v3 = vsel %vm528_vm0, %v1792_v47, %v1796_v62  ;;  %1567 = vmatpush1.bf16.msk.msra.mxu0 %vm1566_vm8, %v1565_v58  ;;  %v535_v4 = vsel %vm528_vm0, %v1797_v61, %v1801_v60  ;;  %v621_v58 = vld [vmem:[%s2737_s2 + $0x10] sm:$0xff]  ;;  %v622_v59 = vld [vmem:[%s2737_s2 + $0x18] sm:$0xff]  ;;  %v734_v60 = vstv %s733_s17 }
  0xcf   : > { %v1568_v5 = vpack.c.bf16 %v536_v2, %v534_v3  ;;  %1809 = vrot.lane.b32.xlu1 %v1808_v0, %s2059_s23  ;;  %1804 = vrot.lane.b32.xlu0 %v1803_v1, %s2059_s23  ;;  %v551_v6 = vsel %vm2263_vm5, %v535_v4, 0.0  ;;  %v552_v7 = vsel %vm2267_vm6, %v536_v2, 0.0  ;;  %v1571_v8 = vpack.c.bf16 %v535_v4, %v533_v63 }
  0xd0   : > { %v1818_v9 = vpack.i.bf16 %v552_v7, %v551_v6  ;;  %v550_v11 = vsel %vm2267_vm6, %v534_v3, 0.0  ;;  %v735_v61 = vadd.s32 %v734_v60, %v2254_v28  ;;  %v736_v62 = vadd.s32 %v734_v60, %v2257_v29 }
  0xd1   : > { %1570 = vmatprep.subr.msk.bf16.mxu0 %vm1563_vm7, %v1568_v5  ;;  %v1813_v12 = vpack.i.bf16 %v550_v11, %v549_v10 }
  0xd2   : > { %1573 = vmatpush1.bf16.msk.msra.mxu0 %vm1566_vm8, %v1571_v8  ;;  %vm737_vm12 = vcmp.ge.s32.totalorder %v735_v61, 0  ;;  %vm739_vm13 = vcmp.lt.s32.totalorder %v735_v61, 300  ;;  %vm738_vm14 = vcmp.ge.s32.totalorder %v736_v62, 0  ;;  %vm740_vm15 = vcmp.lt.s32.totalorder %v736_v62, 300 }
  0xd3   : > { %1819 = vrot.lane.b32.xlu1 %v1818_v9, %s2059_s23  ;;  %1814 = vrot.lane.b32.xlu0 %v1813_v12, %s2059_s23  ;;  %vm2362_vm0 = vmand %vm737_vm12, %vm739_vm13 }
  0xd4   : > { %vm2366_vm1 = vmand %vm738_vm14, %vm740_vm15 }
  0xd5   : > { %vm1591_vm2 = vmpackc.low %vm2366_vm1, %vm2366_vm1 }
  0xd6   : > { %vm1594_vm3 = vmpackc.low %vm2362_vm0, %vm2362_vm0 }
  0xd7   : > { %1829 = vrot.lane.b32.xlu1 %v1808_v0, %s2061_s16  ;;  %1824 = vrot.lane.b32.xlu0 %v1803_v1, %s2061_s16 }
  0xdb   : > { %1839 = vrot.lane.b32.xlu1 %v1818_v9, %s2061_s16  ;;  %1834 = vrot.lane.b32.xlu0 %v1813_v12, %s2061_s16 }
 0x141   : > { %v1810_v14 = vpop.permute.xlu1 %1809  ;;  %v1805_v15 = vpop.permute.xlu0 %1804 }
 0x142   : > { %v1812_v16 = vunpack.i.h.bf16 %v1810_v14  ;;  %v1811_v17 = vunpack.i.l.bf16 %v1810_v14  ;;  %v1807_v18 = vunpack.i.h.bf16 %v1805_v15  ;;  %v1806_v19 = vunpack.i.l.bf16 %v1805_v15 }
 0x144   : > { %v1574_v20 = vpack.c.bf16 %v1812_v16, %v1807_v18  ;;  %v578_v21 = vsel %vm577_vm9, %v1806_v19, %v1807_v18  ;;  %v579_v22 = vsel %vm577_vm9, %v1811_v17, %v1812_v16 }
 0x145   : > { %v1820_v23 = vpop.permute.xlu1 %1819  ;;  %v1815_v24 = vpop.permute.xlu0 %1814  ;;  %v1576_v25 = vpack.c.bf16 %v579_v22, %v578_v21 }
 0x146   : > { %v1822_v26 = vunpack.i.h.bf16 %v1820_v23  ;;  %v1821_v27 = vunpack.i.l.bf16 %v1820_v23  ;;  %v1817_v30 = vunpack.i.h.bf16 %v1815_v24  ;;  %v1816_v31 = vunpack.i.l.bf16 %v1815_v24  ;;  %1575 = vmatprep.subr.bf16.mxu0 %v1574_v20 }
 0x147   : > { %1577 = vmatpush1.bf16.msra.mxu0 %v1576_v25 }
 0x148   : > { %v1578_v32 = vpack.c.bf16 %v1822_v26, %v1817_v30  ;;  %v580_v33 = vsel %vm577_vm9, %v1816_v31, %v1817_v30  ;;  %v581_v34 = vsel %vm577_vm9, %v1821_v27, %v1822_v26 }
 0x149   : > { %v1830_v35 = vpop.permute.xlu1 %1829  ;;  %v1825_v36 = vpop.permute.xlu0 %1824  ;;  %v1580_v37 = vpack.c.bf16 %v581_v34, %v580_v33 }
 0x14a   : > { %v1832_v38 = vunpack.i.h.bf16 %v1830_v35  ;;  %v1831_v39 = vunpack.i.l.bf16 %v1830_v35  ;;  %v1827_v40 = vunpack.i.h.bf16 %v1825_v36  ;;  %v1826_v41 = vunpack.i.l.bf16 %v1825_v36  ;;  %1579 = vmatprep.subr.bf16.mxu0 %v1578_v32  ;;  %v823_v36 = vld [vmem:[%s2741_s6] sm:$0xff] }
 0x14b   : > { %1581 = vmatpush1.bf16.msra.mxu0 %v1580_v37  ;;  %v824_v37 = vld [vmem:[%s2741_s6 + $0x8] sm:$0xff] }
 0x14c   : > { %v1582_v42 = vpack.c.bf16 %v1832_v38, %v1827_v40  ;;  %v607_v43 = vsel %vm606_vm10, %v1826_v41, %v1827_v40  ;;  %v608_v44 = vsel %vm606_vm10, %v1831_v39, %v1832_v38  ;;  %v2062_v38 = vmov 0   ;;  %v825_v39 = vld [vmem:[%s2741_s6 + $0x10] sm:$0xff]  ;;  %v826_v40 = vld [vmem:[%s2741_s6 + $0x18] sm:$0xff] }
 0x14d   : > { %v1840_v45 = vpop.permute.xlu1 %1839  ;;  %v1835_v46 = vpop.permute.xlu0 %1834  ;;  %v1584_v47 = vpack.c.bf16 %v608_v44, %v607_v43  ;;  %1863 = vset.pattern.permute.xlu0 %v2062_v38  ;;  %1864 = vset.pattern.permute.xlu1 %v2062_v38 }
 0x14e   : > { %v1842_v48 = vunpack.i.h.bf16 %v1840_v45  ;;  %v1841_v49 = vunpack.i.l.bf16 %v1840_v45  ;;  %v1837_v50 = vunpack.i.h.bf16 %v1835_v46  ;;  %v1836_v51 = vunpack.i.l.bf16 %v1835_v46  ;;  %1583 = vmatprep.subr.bf16.mxu0 %v1582_v42 }
 0x14f   : > { %1585 = vmatpush1.bf16.msra.mxu0 %v1584_v47 }
 0x150   : > { %v1586_v52 = vpack.c.bf16 %v1842_v48, %v1837_v50  ;;  %v609_v53 = vsel %vm606_vm10, %v1836_v51, %v1837_v50  ;;  %v610_v54 = vsel %vm606_vm10, %v1841_v49, %v1842_v48 }
 0x151   : > { %v1588_v55 = vpack.c.bf16 %v610_v54, %v609_v53 }
 0x152   : > { %1587 = vmatprep.subr.bf16.mxu0 %v1586_v52 }
 0x153   : > { %1589 = vmatpush1.bf16.msra.mxu0 %v1588_v55 }
 0x156   : > { %1483 = vmatmul.mubr.msk.f32.vlgmr.msra.gmra.mrb[0].mxu0 %vm623_vm11, %v619_v56 }
 0x157   : > { %706 = vmatprep.mubr.f32.mxu0 %v2060_v13 }
 0x15a   : > { %1484 = vmatmul.mubr.msk.f32.gmra.mrb[2].mxu0 %vm623_vm11, %v620_v57 }
 0x15b   : > { %712 = vmatprep.mubr.f32.mxu0 %v2060_v13 }
 0x15e   : > { %1485 = vmatmul.mubr.msk.f32.gmra.mrb[4].mxu0 %vm623_vm11, %v621_v58 }
 0x15f   : > { %718 = vmatprep.mubr.f32.mxu0 %v2060_v13 }
 0x162   : > { %1486 = vmatmul.mubr.msk.f32.gmra.mrb[6].mxu0 %vm623_vm11, %v622_v59 }
 0x163   : > { %1146 = vmatprep.mubr.f32.mxu0 %v2060_v13 }
 0x229   : > { %v702_v63 = vpop.f32.mrb[0].mxu0 }
 0x22a   : > { %v725_v1 = vmax.f32 %v702_v63, 0.0  ;;  %v704_v2 = vpop.f32.mrb[1].mxu0 }
 0x22b   : > { %v726_v4 = vmax.f32 %v704_v2, 0.0 }
 0x22c   : > { %v747_v5 = vsel %vm2362_vm0, %v725_v1, 0.0 }
 0x22d   : > { %791 = vrot.lane.b32.xlu0 %v747_v5, %s2061_s16  ;;  %v708_v6 = vpop.f32.mrb[2].mxu0  ;;  %v748_v7 = vsel %vm2366_vm1, %v726_v4, 0.0 }
 0x22e   : > { %v727_v8 = vmax.f32 %v708_v6, 0.0  ;;  %793 = vrot.lane.b32.xlu1 %v748_v7, %s2061_s16  ;;  %v1843_v9 = vpack.i.bf16 %v748_v7, %v747_v5  ;;  %v710_v10 = vpop.f32.mrb[3].mxu0 }
 0x22f   : > { %v728_v11 = vmax.f32 %v710_v10, 0.0 }
 0x230   : > { %v749_v12 = vsel %vm2362_vm0, %v727_v8, 0.0  ;;  %v1593_v14 = vpack.c.bf16 %v727_v8, %v725_v1 }
 0x231   : > { %v750_v15 = vsel %vm2366_vm1, %v728_v11, 0.0  ;;  %1844 = vrot.lane.b32.xlu0 %v1843_v9, %s2059_s23  ;;  %v714_v16 = vpop.f32.mrb[4].mxu0  ;;  %v1590_v17 = vpack.c.bf16 %v728_v11, %v726_v4 }
 0x232   : > { %v1848_v18 = vpack.i.bf16 %v750_v15, %v749_v12  ;;  %v729_v19 = vmax.f32 %v714_v16, 0.0  ;;  %v716_v20 = vpop.f32.mrb[5].mxu0  ;;  %v821_v16 = vld [vmem:[%s2738_s3 + $0x10] sm:$0xff] }
 0x233   : > { %v730_v21 = vmax.f32 %v716_v20, 0.0  ;;  %1592 = vmatprep.subr.msk.bf16.mxu1 %vm1591_vm2, %v1590_v17  ;;  %v822_v17 = vld [vmem:[%s2738_s3 + $0x18] sm:$0xff] }
 0x234   : > { %v751_v22 = vsel %vm2362_vm0, %v729_v19, 0.0  ;;  %1595 = vmatpush1.bf16.msk.msra.mxu1 %vm1594_vm3, %v1593_v14  ;;  %1849 = vrot.lane.b32.xlu1 %v1848_v18, %s2059_s23  ;;  %v819_v14 = vld [vmem:[%s2738_s3] sm:$0xff]  ;;  %v957_v18 = vstv %s956_s18  ;;  %s1357_s18 = sshll.u32 %s2251_s21, 4  ;;  %s2673_s18 = int_to_ptr.vmem [resolvable:$true] %s1357_s18 }
 0x235   : > { %v752_v23 = vsel %vm2366_vm1, %v730_v21, 0.0  ;;  %795 = vrot.lane.b32.xlu0 %v749_v12, %s2061_s16  ;;  %v720_v24 = vpop.f32.mrb[6].mxu0  ;;  %v959_v20 = vadd.s32 %v957_v18, %v2257_v29  ;;  %s1945_s26 = scalar_lea.vmem %s2673_s18, 256 }
 0x236   : > { %v1853_v25 = vpack.i.bf16 %v752_v23, %v751_v22  ;;  %v731_v26 = vmax.f32 %v720_v24, 0.0  ;;  %v722_v27 = vpop.f32.mrb[7].mxu0  ;;  %p1946_p7 = scmp.ne.s32.totalorder %s2673_s18, %s1945_s26 }
 0x237   : > { %v732_v30 = vmax.f32 %v722_v27, 0.0  ;;  %vm961_vm6 = vcmp.ge.s32.totalorder %v959_v20, 0  ;;  %vm963_vm7 = vcmp.lt.s32.totalorder %v959_v20, 300 }
 0x238   : > { %v753_v31 = vsel %vm2362_vm0, %v731_v26, 0.0  ;;  %v1599_v32 = vpack.c.bf16 %v731_v26, %v729_v19  ;;  %797 = vrot.lane.b32.xlu1 %v750_v15, %s2061_s16  ;;  %v820_v15 = vld [vmem:[%s2738_s3 + $0x8] sm:$0xff]  ;;  %v958_v19 = vadd.s32 %v957_v18, %v2254_v28  ;;  %vm2498_vm12 = vmand %vm961_vm6, %vm963_vm7  ;;  %p1947_p8 = pnand %p1946_p7, %p2207_p11 }
 0x239   : > { %v754_v33 = vsel %vm2366_vm1, %v732_v30, 0.0  ;;  %v1596_v34 = vpack.c.bf16 %v732_v30, %v730_v21  ;;  %1854 = vrot.lane.b32.xlu0 %v1853_v25, %s2059_s23  ;;  %vm1619_vm13 = vmpackc.low %vm2498_vm12, %vm2498_vm12 }
 0x23a   : > { %v1858_v35 = vpack.i.bf16 %v754_v33, %v753_v31  ;;  %vm960_vm4 = vcmp.ge.s32.totalorder %v958_v19, 0  ;;  %vm962_vm5 = vcmp.lt.s32.totalorder %v958_v19, 300  ;;  %p1948_p9 = pneg %p1947_p8 }
 0x23b   : > { %1598 = vmatprep.subr.msk.bf16.mxu1 %vm1591_vm2, %v1596_v34  ;;  %vm2494_vm8 = vmand %vm960_vm4, %vm962_vm5 }
 0x23c   : > { %1601 = vmatpush1.bf16.msk.msra.mxu1 %vm1594_vm3, %v1599_v32  ;;  %1859 = vrot.lane.b32.xlu1 %v1858_v35, %s2059_s23  ;;  %vm1622_vm14 = vmpackc.low %vm2494_vm8, %vm2494_vm8 }
 0x23d   : > { %799 = vrot.lane.b32.xlu0 %v751_v22, %s2061_s16 }
 0x240   : > { %801 = vrot.lane.b32.xlu1 %v752_v23, %s2061_s16 }
 0x241   : > { %803 = vrot.lane.b32.xlu0 %v753_v31, %s2061_s16 }
 0x244   : > { %805 = vrot.lane.b32.xlu1 %v754_v33, %s2061_s16 }
 0x245   : > { %829 = vperm.xlu0 %1863, %v823_v36  }
 0x248   : > { %834 = vperm.xlu1 %1864, %v824_v37  }
 0x249   : > { %844 = vperm.xlu0 %1863, %v826_v40  }
 0x24c   : > { %839 = vperm.xlu1 %1864, %v825_v39  }
 0x29f   : > { %v792_v41 = vpop.permute.xlu0 %791 }
 0x2a0   : > { %v2436_v42 = vpop.permute.xlu1 %793 }
 0x2a1   : > { %v2454_v5 = vsel %vm606_vm10, %v792_v41, %v2436_v42 }
 0x2a3   : > { %v1845_v43 = vpop.permute.xlu0 %1844 }
 0x2a4   : > { %v1847_v44 = vunpack.i.h.bf16 %v1845_v43  ;;  %v1846_v45 = vunpack.i.l.bf16 %v1845_v43 }
 0x2a6   : > { %v1850_v46 = vpop.permute.xlu1 %1849  ;;  %v779_v51 = vsel %vm577_vm9, %v1846_v45, %v1847_v44 }
 0x2a7   : > { %v1852_v47 = vunpack.i.h.bf16 %v1850_v46  ;;  %v1851_v48 = vunpack.i.l.bf16 %v1850_v46  ;;  %v796_v49 = vpop.permute.xlu0 %795 }
 0x2a9   : > { %v1602_v50 = vpack.c.bf16 %v1852_v47, %v1847_v44  ;;  %v780_v52 = vsel %vm577_vm9, %v1851_v48, %v1852_v47 }
 0x2aa   : > { %v2440_v53 = vpop.permute.xlu1 %797  ;;  %v1604_v54 = vpack.c.bf16 %v780_v52, %v779_v51 }
 0x2ab   : > { %v1855_v55 = vpop.permute.xlu0 %1854  ;;  %1603 = vmatprep.subr.bf16.mxu1 %v1602_v50  ;;  %v2448_v3 = vsel %vm606_vm10, %v796_v49, %v2440_v53  ;;  %v1610_v4 = vpack.c.bf16 %v2440_v53, %v2436_v42 }
 0x2ac   : > { %1605 = vmatpush1.bf16.msra.mxu1 %v1604_v54  ;;  %v1857_v56 = vunpack.i.h.bf16 %v1855_v55  ;;  %v1856_v57 = vunpack.i.l.bf16 %v1855_v55  ;;  %v1612_v8 = vpack.c.bf16 %v2448_v3, %v2454_v5 }
 0x2ae   : > { %v1860_v58 = vpop.permute.xlu1 %1859  ;;  %v781_v63 = vsel %vm577_vm9, %v1856_v57, %v1857_v56 }
 0x2af   : > { %v1862_v59 = vunpack.i.h.bf16 %v1860_v58  ;;  %v1861_v60 = vunpack.i.l.bf16 %v1860_v58  ;;  %v800_v61 = vpop.permute.xlu0 %799 }
 0x2b1   : > { %v1606_v62 = vpack.c.bf16 %v1862_v59, %v1857_v56  ;;  %v782_v0 = vsel %vm577_vm9, %v1861_v60, %v1862_v59 }
 0x2b2   : > { %v2444_v1 = vpop.permute.xlu1 %801  ;;  %v1608_v2 = vpack.c.bf16 %v782_v0, %v781_v63 }
 0x2b3   : > { %1607 = vmatprep.subr.bf16.mxu1 %v1606_v62  ;;  %v804_v6 = vpop.permute.xlu0 %803  ;;  %v2468_v11 = vsel %vm606_vm10, %v800_v61, %v2444_v1 }
 0x2b4   : > { %1609 = vmatpush1.bf16.msra.mxu1 %v1608_v2 }
 0x2b5   : > { %1611 = vmatprep.subr.bf16.mxu1 %v1610_v4 }
 0x2b6   : > { %v2456_v7 = vpop.permute.xlu1 %805 }
 0x2b7   : > { %v2462_v9 = vsel %vm606_vm10, %v804_v6, %v2456_v7  ;;  %v1614_v10 = vpack.c.bf16 %v2456_v7, %v2444_v1 }
 0x2b8   : > { %1613 = vmatpush1.bf16.msra.mxu1 %v1612_v8  ;;  %v1616_v12 = vpack.c.bf16 %v2462_v9, %v2468_v11 }
 0x2b9   : > { %1615 = vmatprep.subr.bf16.mxu1 %v1614_v10 }
 0x2bc   : > { %1617 = vmatpush1.bf16.msra.mxu1 %v1616_v12 }
 0x2bf   : > { %1495 = vmatmul.mubr.msk.f32.vlgmr.msra.gmra.mrb[0].mxu1 %vm623_vm11, %v819_v14  ;;  %v1046_v14 = vld [vmem:[%s2742_s7] sm:$0xff] }
 0x2c0   : > { %929 = vmatprep.mubr.f32.mxu1 %v2060_v13 }
 0x2c3   : > { %1496 = vmatmul.mubr.msk.f32.gmra.mrb[2].mxu1 %vm623_vm11, %v820_v15  ;;  %v1047_v15 = vld [vmem:[%s2742_s7 + $0x8] sm:$0xff] }
 0x2c4   : > { %935 = vmatprep.mubr.f32.mxu1 %v2060_v13  ;;  %v830_v21 = vpop.permute.xlu0 %829 }
 0x2c7   : > { %1497 = vmatmul.mubr.msk.f32.gmra.mrb[4].mxu1 %vm623_vm11, %v821_v16  ;;  %v835_v23 = vpop.permute.xlu1 %834  ;;  %v1048_v16 = vld [vmem:[%s2742_s7 + $0x10] sm:$0xff] }
 0x2c8   : > { %941 = vmatprep.mubr.f32.mxu1 %v2060_v13  ;;  %v845_v55 = vpop.permute.xlu0 %844 }
 0x2cb   : > { %1498 = vmatmul.mubr.msk.f32.gmra.mrb[6].mxu1 %vm623_vm11, %v822_v17  ;;  %v840_v39 = vpop.permute.xlu1 %839  ;;  %v1049_v17 = vld [vmem:[%s2742_s7 + $0x18] sm:$0xff] }
 0x392   : > { %v925_v22 = vpop.f32.mrb[0].mxu1 }
 0x393   : > { %v926_v24 = vadd.f32 %v925_v22, %v830_v21  ;;  %v927_v25 = vpop.f32.mrb[1].mxu1 }
 0x394   : > { %v928_v27 = vadd.f32 %v927_v25, %v830_v21 }
 0x395   : > { %v948_v30 = vmax.f32 %v926_v24, 0.0 }
 0x396   : > { %v949_v32 = vmax.f32 %v928_v27, 0.0  ;;  %v931_v33 = vpop.f32.mrb[2].mxu1 }
 0x397   : > { %v970_v34 = vsel %vm2494_vm8, %v948_v30, 0.0  ;;  %v932_v35 = vadd.f32 %v931_v33, %v835_v23  ;;  %v933_v36 = vpop.f32.mrb[3].mxu1 }
 0x398   : > { %v971_v37 = vsel %vm2498_vm12, %v949_v32, 0.0  ;;  %v934_v38 = vadd.f32 %v933_v36, %v835_v23 }
 0x399   : > { %v950_v40 = vmax.f32 %v932_v35, 0.0  ;;  %v1865_v41 = vpack.i.bf16 %v971_v37, %v970_v34 }
 0x39a   : > { %v951_v43 = vmax.f32 %v934_v38, 0.0  ;;  %v937_v44 = vpop.f32.mrb[4].mxu1 }
 0x39b   : > { %v972_v45 = vsel %vm2494_vm8, %v950_v40, 0.0  ;;  %v1621_v46 = vpack.c.bf16 %v950_v40, %v948_v30  ;;  %v938_v47 = vadd.f32 %v937_v44, %v840_v39  ;;  %v939_v48 = vpop.f32.mrb[5].mxu1  ;;  %1866 = vrot.lane.b32.xlu1 %v1865_v41, %s2059_s23 }
 0x39c   : > { %v973_v49 = vsel %vm2498_vm12, %v951_v43, 0.0  ;;  %v1618_v50 = vpack.c.bf16 %v951_v43, %v949_v32  ;;  %v940_v51 = vadd.f32 %v939_v48, %v840_v39 }
 0x39d   : > { %v952_v52 = vmax.f32 %v938_v47, 0.0  ;;  %v1870_v54 = vpack.i.bf16 %v973_v49, %v972_v45 }
 0x39e   : > { %v953_v56 = vmax.f32 %v940_v51, 0.0  ;;  %v943_v57 = vpop.f32.mrb[6].mxu1  ;;  %1620 = vmatprep.subr.msk.bf16.mxu0 %vm1619_vm13, %v1618_v50 }
 0x39f   : > { %v974_v58 = vsel %vm2494_vm8, %v952_v52, 0.0  ;;  %v944_v59 = vadd.f32 %v943_v57, %v845_v55  ;;  %v945_v60 = vpop.f32.mrb[7].mxu1  ;;  %1871 = vrot.lane.b32.xlu0 %v1870_v54, %s2059_s23  ;;  %1623 = vmatpush1.bf16.msk.msra.mxu0 %vm1622_vm14, %v1621_v46 }
 0x3a0   : > { %v975_v61 = vsel %vm2498_vm12, %v953_v56, 0.0  ;;  %v946_v62 = vadd.f32 %v945_v60, %v845_v55 }
 0x3a1   : > { %v954_v63 = vmax.f32 %v944_v59, 0.0  ;;  %v1875_v0 = vpack.i.bf16 %v975_v61, %v974_v58 }
 0x3a2   : > { %v955_v2 = vmax.f32 %v946_v62, 0.0  ;;  %v1042_v62 = vld [vmem:[%s2739_s4] sm:$0xff] }
 0x3a3   : > { %v976_v4 = vsel %vm2494_vm8, %v954_v63, 0.0  ;;  %v1627_v6 = vpack.c.bf16 %v954_v63, %v952_v52  ;;  %1876 = vrot.lane.b32.xlu1 %v1875_v0, %s2059_s23  ;;  %v1043_v63 = vld [vmem:[%s2739_s4 + $0x8] sm:$0xff] }
 0x3a4   : > { %v977_v8 = vsel %vm2498_vm12, %v955_v2, 0.0  ;;  %v1624_v10 = vpack.c.bf16 %v955_v2, %v953_v56  ;;  %v1045_v2 = vld [vmem:[%s2739_s4 + $0x18] sm:$0xff] }
 0x3a5   : > { %v1885_v12 = vpack.i.bf16 %v977_v8, %v976_v4  ;;  %v1180_v4 = vstv %s1179_s22 }
 0x3a6   : > { %1626 = vmatprep.subr.msk.bf16.mxu0 %vm1619_vm13, %v1624_v10  ;;  %v1182_v8 = vadd.s32 %v1180_v4, %v2257_v29 }
 0x3a7   : > { %1886 = vrot.lane.b32.xlu0 %v1885_v12, %s2059_s23  ;;  %1629 = vmatpush1.bf16.msk.msra.mxu0 %vm1622_vm14, %v1627_v6  ;;  %v1181_v6 = vadd.s32 %v1180_v4, %v2254_v28 }
 0x3a8   : > { %1881 = vrot.lane.b32.xlu1 %v1865_v41, %s2061_s16  ;;  %vm1184_vm1 = vcmp.ge.s32.totalorder %v1182_v8, 0  ;;  %vm1186_vm2 = vcmp.lt.s32.totalorder %v1182_v8, 300 }
 0x3a9   : > { %vm1183_vm15 = vcmp.ge.s32.totalorder %v1181_v6, 0  ;;  %vm1185_vm0 = vcmp.lt.s32.totalorder %v1181_v6, 300  ;;  %vm2599_vm4 = vmand %vm1184_vm1, %vm1186_vm2 }
 0x3aa   : > { %vm2594_vm3 = vmand %vm1183_vm15, %vm1185_vm0 }
 0x3ab   : > { %1891 = vrot.lane.b32.xlu0 %v1870_v54, %s2061_s16  ;;  %vm2613_vm5 = vmpackc.low %vm2594_vm3, %vm2594_vm3 }
 0x3ac   : > { %1896 = vrot.lane.b32.xlu1 %v1875_v0, %s2061_s16  ;;  %v1044_v0 = vld [vmem:[%s2739_s4 + $0x10] sm:$0xff] }
 0x3af   : > { %1901 = vrot.lane.b32.xlu0 %v1885_v12, %s2061_s16 }
 0x3b0   : > { %1052 = vperm.xlu1 %1864, %v1046_v14  }
 0x3b3   : > { %1057 = vperm.xlu0 %1863, %v1047_v15  }
 0x3b4   : > { %1062 = vperm.xlu1 %1864, %v1048_v16  }
 0x3b7   : > { %1067 = vperm.xlu0 %1863, %v1049_v17  }
 0x40d   : > { %v1867_v18 = vpop.permute.xlu1 %1866 }
 0x40e   : > { %v1869_v19 = vunpack.i.h.bf16 %v1867_v18  ;;  %v1868_v20 = vunpack.i.l.bf16 %v1867_v18 }
 0x410   : > { %v1002_v24 = vsel %vm577_vm9, %v1868_v20, %v1869_v19 }
 0x411   : > { %v1872_v21 = vpop.permute.xlu0 %1871 }
 0x412   : > { %v1874_v22 = vunpack.i.h.bf16 %v1872_v21  ;;  %v1873_v23 = vunpack.i.l.bf16 %v1872_v21 }
 0x414   : > { %v1003_v25 = vsel %vm577_vm9, %v1873_v23, %v1874_v22  ;;  %v1630_v26 = vpack.c.bf16 %v1874_v22, %v1869_v19 }
 0x415   : > { %v1632_v27 = vpack.c.bf16 %v1003_v25, %v1002_v24  ;;  %v1877_v30 = vpop.permute.xlu1 %1876 }
 0x416   : > { %1631 = vmatprep.subr.bf16.mxu0 %v1630_v26  ;;  %v1879_v31 = vunpack.i.h.bf16 %v1877_v30  ;;  %v1878_v32 = vunpack.i.l.bf16 %v1877_v30 }
 0x417   : > { %1633 = vmatpush1.bf16.msra.mxu0 %v1632_v27 }
 0x418   : > { %v1004_v39 = vsel %vm577_vm9, %v1878_v32, %v1879_v31 }
 0x419   : > { %v1887_v33 = vpop.permute.xlu0 %1886 }
 0x41a   : > { %v1889_v34 = vunpack.i.h.bf16 %v1887_v33  ;;  %v1888_v35 = vunpack.i.l.bf16 %v1887_v33  ;;  %v1882_v36 = vpop.permute.xlu1 %1881 }
 0x41b   : > { %v1884_v37 = vunpack.i.h.bf16 %v1882_v36  ;;  %v1883_v38 = vunpack.i.l.bf16 %v1882_v36 }
 0x41c   : > { %v1005_v40 = vsel %vm577_vm9, %v1888_v35, %v1889_v34  ;;  %v1634_v41 = vpack.c.bf16 %v1889_v34, %v1879_v31 }
 0x41d   : > { %v1636_v43 = vpack.c.bf16 %v1005_v40, %v1004_v39  ;;  %v1892_v44 = vpop.permute.xlu0 %1891  ;;  %v1030_v48 = vsel %vm606_vm10, %v1883_v38, %v1884_v37 }
 0x41e   : > { %v1894_v45 = vunpack.i.h.bf16 %v1892_v44  ;;  %v1893_v46 = vunpack.i.l.bf16 %v1892_v44  ;;  %v1897_v47 = vpop.permute.xlu1 %1896  ;;  %1635 = vmatprep.subr.bf16.mxu0 %v1634_v41 }
 0x41f   : > { %1637 = vmatpush1.bf16.msra.mxu0 %v1636_v43  ;;  %v1899_v51 = vunpack.i.h.bf16 %v1897_v47  ;;  %v1898_v52 = vunpack.i.l.bf16 %v1897_v47 }
 0x420   : > { %v1031_v49 = vsel %vm606_vm10, %v1893_v46, %v1894_v45  ;;  %v1638_v50 = vpack.c.bf16 %v1894_v45, %v1884_v37 }
 0x421   : > { %v1640_v54 = vpack.c.bf16 %v1031_v49, %v1030_v48  ;;  %v1902_v55 = vpop.permute.xlu0 %1901  ;;  %v1032_v58 = vsel %vm606_vm10, %v1898_v52, %v1899_v51 }
 0x422   : > { %v1904_v56 = vunpack.i.h.bf16 %v1902_v55  ;;  %v1903_v57 = vunpack.i.l.bf16 %v1902_v55  ;;  %1639 = vmatprep.subr.bf16.mxu0 %v1638_v50 }
 0x423   : > { %1641 = vmatpush1.bf16.msra.mxu0 %v1640_v54 }
 0x424   : > { %v1033_v59 = vsel %vm606_vm10, %v1903_v57, %v1904_v56  ;;  %v1642_v60 = vpack.c.bf16 %v1904_v56, %v1899_v51 }
 0x425   : > { %v1644_v61 = vpack.c.bf16 %v1033_v59, %v1032_v58 }
 0x426   : > { %1643 = vmatprep.subr.bf16.mxu0 %v1642_v60 }
 0x427   : > { %1645 = vmatpush1.bf16.msra.mxu0 %v1644_v61 }
 0x42a   : > { %1507 = vmatmul.mubr.msk.f32.vlgmr.msra.gmra.mrb[8].mxu0 %vm623_vm11, %v1042_v62 }
 0x42b   : > { %1152 = vmatprep.mubr.f32.mxu0 %v2060_v13 }
 0x42e   : > { %1508 = vmatmul.mubr.msk.f32.gmra.mrb[10].mxu0 %vm623_vm11, %v1043_v63 }
 0x42f   : > { %1158 = vmatprep.mubr.f32.mxu0 %v2060_v13  ;;  %v1053_v10 = vpop.permute.xlu1 %1052 }
 0x432   : > { %1509 = vmatmul.mubr.msk.f32.gmra.mrb[12].mxu0 %vm623_vm11, %v1044_v0  ;;  %v1058_v28 = vpop.permute.xlu0 %1057 }
 0x433   : > { %1164 = vmatprep.mubr.f32.mxu0 %v2060_v13  ;;  %v1063_v26 = vpop.permute.xlu1 %1062 }
 0x436   : > { %1510 = vmatmul.mubr.msk.f32.gmra.mrb[14].mxu0 %vm623_vm11, %v1045_v2  ;;  %v1068_v37 = vpop.permute.xlu0 %1067 }
 0x4fd   : > { %v1148_v12 = vpop.f32.mrb[8].mxu0 }
 0x4fe   : > { %v1149_v14 = vadd.f32 %v1148_v12, %v1053_v10  ;;  %v1150_v13 = vpop.f32.mrb[9].mxu0 }
 0x4ff   : > { %v1151_v16 = vadd.f32 %v1150_v13, %v1053_v10 }
 0x500   : > { %v1171_v17 = vadd.f32 %v1149_v14, %v2454_v5 }
 0x501   : > { %v1172_v29 = vadd.f32 %v1151_v16, %v2436_v42  ;;  %v1154_v19 = vpop.f32.mrb[10].mxu0 }
 0x502   : > { %v1193_v20 = vsel %vm2594_vm3, %v1171_v17, 0.0  ;;  %v1155_v21 = vadd.f32 %v1154_v19, %v1058_v28  ;;  %v1156_v22 = vpop.f32.mrb[11].mxu0 }
 0x503   : > { %v1194_v23 = vsel %vm2599_vm4, %v1172_v29, 0.0  ;;  %v1157_v24 = vadd.f32 %v1156_v22, %v1058_v28 }
 0x504   : > { %v1173_v25 = vadd.f32 %v1155_v21, %v2448_v3  ;;  %v1905_v5 = vpack.i.bf16 %v1194_v23, %v1193_v20 }
 0x505   : > { %v1174_v27 = vadd.f32 %v1157_v24, %v2440_v53  ;;  %v1160_v30 = vpop.f32.mrb[12].mxu0 }
 0x506   : > { %v1195_v31 = vsel %vm2594_vm3, %v1173_v25, 0.0  ;;  %v1646_v32 = vpack.c.bf16 %v1173_v25, %v1171_v17  ;;  %v1161_v33 = vadd.f32 %v1160_v30, %v1063_v26  ;;  %v1162_v34 = vpop.f32.mrb[13].mxu0  ;;  %1906 = vrot.lane.b32.xlu1 %v1905_v5, %s2059_s23 }
 0x507   : > { %v1196_v3 = vsel %vm2599_vm4, %v1174_v27, 0.0  ;;  %v1163_v53 = vadd.f32 %v1162_v34, %v1063_v26  ;;  %v1258_v26 = vld [vmem:[%s2779_s25 + $0x8] sm:$0xff] }
 0x508   : > { %v1175_v35 = vadd.f32 %v1161_v33, %v2468_v11  ;;  %1648 = vmatprep.subr.msk.bf16.mxu1 %vm2613_vm5, %v1646_v32  ;;  %v1910_v36 = vpack.i.bf16 %v1196_v3, %v1195_v31 }
 0x509   : > { %v1176_v38 = vadd.f32 %v1163_v53, %v2444_v1  ;;  %v1166_v39 = vpop.f32.mrb[14].mxu0  ;;  %1651 = vmatpush3.bf16.msk.msra.mxu1 %vm2613_vm5, %v1646_v32 }
 0x50a   : > { %v1197_v40 = vsel %vm2594_vm3, %v1175_v35, 0.0  ;;  %v1167_v41 = vadd.f32 %v1166_v39, %v1068_v37  ;;  %v1168_v43 = vpop.f32.mrb[15].mxu0  ;;  %1911 = vrot.lane.b32.xlu0 %v1910_v36, %s2059_s23 }
 0x50b   : > { %v1198_v11 = vsel %vm2599_vm4, %v1176_v38, 0.0  ;;  %v1169_v44 = vadd.f32 %v1168_v43, %v1068_v37 }
 0x50c   : > { %v1177_v45 = vadd.f32 %v1167_v41, %v2462_v9  ;;  %v1915_v46 = vpack.i.bf16 %v1198_v11, %v1197_v40 }
 0x50d   : > { %v1178_v1 = vadd.f32 %v1169_v44, %v2456_v7  ;;  %v1257_v7 = vld [vmem:[%s2779_s25] sm:$0xff] }
 0x50e   : > { %v1199_v47 = vsel %vm2594_vm3, %v1177_v45, 0.0  ;;  %v1652_v48 = vpack.c.bf16 %v1177_v45, %v1175_v35  ;;  %1916 = vrot.lane.b32.xlu1 %v1915_v46, %s2059_s23  ;;  %1559 = vmatprep.mubr.msk.f32.mxu1 %vm623_vm11, %v1257_v7 }
 0x50f   : > { %v1200_v49 = vsel %vm2599_vm4, %v1178_v1, 0.0 }
 0x510   : > { %1654 = vmatprep.subr.msk.bf16.mxu1 %vm2613_vm5, %v1652_v48  ;;  %v1925_v50 = vpack.i.bf16 %v1200_v49, %v1199_v47 }
 0x511   : > { %1657 = vmatpush3.bf16.msk.msra.mxu1 %vm2613_vm5, %v1652_v48 }
 0x512   : > { %1926 = vrot.lane.b32.xlu0 %v1925_v50, %s2059_s23  ;;  %1921 = vrot.lane.b32.xlu1 %v1905_v5, %s2061_s16  ;;  %s2780_s23 = sld [smem:[#allocation8_spill]] }
 0x516   : > { %1931 = vrot.lane.b32.xlu0 %v1910_v36, %s2061_s16  ;;  %1936 = vrot.lane.b32.xlu1 %v1915_v46, %s2061_s16 }
 0x518   : > { %s1676_s24 = smul.u32 6, %s2780_s23 }
 0x51a   : > { %1941 = vrot.lane.b32.xlu0 %v1925_v50, %s2061_s16  ;;  %s1354_s28 = sadd.s32 %s2039_s10, %s1676_s24  ;;  %s1343_s16 = scalar_lea.sflag [#allocation6], %s2242_s8 }
 0x51b   : > { %s1518_s17 = sshll.u32 %s1354_s28, 7  ;;  %s2063_s10 = smov [#allocation5]  }
 0x51c   : > { %s2671_s0 = scalar_lea.hbm %s2781_s20, %s1518_s17  ;;  %s1949_s23 = sshll.u32 %s2063_s10, 4  ;;  %s1950_s23 = int_to_ptr.vmem [resolvable:$false] %s1949_s23 }
 0x51d   : > { %s1951_s24 = scalar_lea.vmem %s1950_s23, 512  ;;  %p1952_p10 = scmp.lt.s32.totalorder %s2673_s18, %s1950_s23 }
 0x51e   : > { %p1953_p12 = scmp.lt.s32.totalorder %s1951_s24, %s1945_s26 }
 0x520   : > { %p1954_p13 = por %p1953_p12, %p1952_p10 }
 0x522   : > { %p1955_p0 = pnand %p1954_p13, %p1948_p9 }
 0x578   : > { %v1907_v9 = vpop.permute.xlu1 %1906 }
 0x579   : > { %v1909_v51 = vunpack.i.h.bf16 %v1907_v9  ;;  %v1908_v52 = vunpack.i.l.bf16 %v1907_v9 }
 0x57b   : > { %v1225_v57 = vsel %vm577_vm9, %v1908_v52, %v1909_v51 }
 0x57c   : > { %v1912_v54 = vpop.permute.xlu0 %1911 }
 0x57d   : > { %v1914_v55 = vunpack.i.h.bf16 %v1912_v54  ;;  %v1913_v56 = vunpack.i.l.bf16 %v1912_v54 }
 0x57f   : > { %v1226_v58 = vsel %vm577_vm9, %v1913_v56, %v1914_v55 }
 0x580   : > { %v1917_v59 = vpop.permute.xlu1 %1916  ;;  %v1658_v60 = vpack.c.bf16 %v1226_v58, %v1225_v57 }
 0x581   : > { %v1919_v61 = vunpack.i.h.bf16 %v1917_v59  ;;  %v1918_v62 = vunpack.i.l.bf16 %v1917_v59 }
 0x582   : > { %1659 = vmatprep.subr.bf16.mxu1 %v1658_v60 }
 0x583   : > { %1661 = vmatpush3.bf16.msra.mxu1 %v1658_v60  ;;  %v1227_v10 = vsel %vm577_vm9, %v1918_v62, %v1919_v61 }
 0x584   : > { %v1927_v63 = vpop.permute.xlu0 %1926  ;;  %v1922_v0 = vpop.permute.xlu1 %1921 }
 0x585   : > { %v1929_v2 = vunpack.i.h.bf16 %v1927_v63  ;;  %v1928_v4 = vunpack.i.l.bf16 %v1927_v63  ;;  %v1924_v6 = vunpack.i.h.bf16 %v1922_v0  ;;  %v1923_v8 = vunpack.i.l.bf16 %v1922_v0 }
 0x587   : > { %v1228_v12 = vsel %vm577_vm9, %v1928_v4, %v1929_v2  ;;  %v1249_v29 = vsel %vm606_vm10, %v1923_v8, %v1924_v6 }
 0x588   : > { %v1932_v14 = vpop.permute.xlu0 %1931  ;;  %v1937_v13 = vpop.permute.xlu1 %1936  ;;  %v1662_v15 = vpack.c.bf16 %v1228_v12, %v1227_v10 }
 0x589   : > { %v1934_v16 = vunpack.i.h.bf16 %v1932_v14  ;;  %v1933_v17 = vunpack.i.l.bf16 %v1932_v14  ;;  %v1939_v18 = vunpack.i.h.bf16 %v1937_v13  ;;  %v1938_v28 = vunpack.i.l.bf16 %v1937_v13 }
 0x58a   : > { %1663 = vmatprep.subr.bf16.mxu1 %v1662_v15 }
 0x58b   : > { %1665 = vmatpush3.bf16.msra.mxu1 %v1662_v15  ;;  %v1250_v19 = vsel %vm606_vm10, %v1933_v17, %v1934_v16  ;;  %v1251_v24 = vsel %vm606_vm10, %v1938_v28, %v1939_v18 }
 0x58c   : > { %v1942_v20 = vpop.permute.xlu0 %1941  ;;  %v1666_v21 = vpack.c.bf16 %v1250_v19, %v1249_v29 }
 0x58d   : > { %v1944_v22 = vunpack.i.h.bf16 %v1942_v20  ;;  %v1943_v23 = vunpack.i.l.bf16 %v1942_v20 }
 0x58e   : > { %1667 = vmatprep.subr.bf16.mxu1 %v1666_v21 }
 0x58f   : > { %1669 = vmatpush3.bf16.msra.mxu1 %v1666_v21  ;;  %v1252_v25 = vsel %vm606_vm10, %v1943_v23, %v1944_v22 }
 0x590   : > { %v1670_v5 = vpack.c.bf16 %v1252_v25, %v1251_v24 }
 0x592   : > { %1671 = vmatprep.subr.bf16.mxu1 %v1670_v5 }
 0x593   : > { %1673 = vmatpush3.bf16.msra.mxu1 %v1670_v5 }
 0x596   : > { %1560 = vmatmul.mubr.msk.f32.vlgmr.msra.gmra.mrb[8].mxu1 %vm623_vm11, %v1258_v26 }
 0x669   : > { %v1561_v27 = vpop.f32.mrb[8].mxu1 }
 0x66a   : > { %1341 = vst [vmem:[%s2251_s21 + $0x8] sm:$0xff] %v1561_v27  ;;  %v1331_v30 = vpop.f32.mrb[9].mxu1 }
 0x66b   : > { %1340 = vst [vmem:[%s2251_s21] sm:$0xff] %v1331_v30 }
 0x66c   : > { %1958 = shalt.err (!%p1955_p0)
}
 0x66d   : > { %s1959_s21 = scalar_lea.hbm %s2671_s0, 256  ;;  %s1963_s22 = scalar_lea.hbm %s2781_s20, 1536 }
 0x66e   : > { %p1960_p2 = scmp.ne.s32.totalorder %s2671_s0, %s1959_s21  ;;  %p1964_p5 = scmp.lt.u32.totalorder %s2671_s0, %s2781_s20 }
 0x66f   : > { %p1965_p6 = scmp.lt.u32.totalorder %s1963_s22, %s1959_s21  ;;  %p1967_p8 = scmp.lt.u32.totalorder %s1959_s21, %s2671_s0 }
 0x670   : > { %p1961_p1 = pnand %p1960_p2, %p2207_p11 }
 0x671   : > { %p1966_p7 = por %p1965_p6, %p1964_p5 }
 0x672   : > { %p1962_p3 = pneg %p1961_p1 }
 0x673   : > { %p1968_p9 = por %p1967_p8, %p1966_p7 }
 0x675   : > { %p1969_p10 = pnand %p1968_p9, %p1962_p3 }
 0x677   : > { %1972 = shalt.err (!%p1969_p10)
}
 0x678   : > { %s2064_s26 = smov 128   ;;  %s2065_s23 = smov 384  }
 0x679   : > { %s2066_s24 = smov 8  }
 0x67a   : > { %1677 = dma.vmem_to_hbm [thread:$0]  (%p2207_p11), %s2673_s18, 256, %s2671_s0, %s1343_s16, %s2064_s26, %s2065_s23, %s2066_s24  }
 0x67b PF: > { %p1683_p12 = scmp.ge.s32.totalorder %s2055_s14, 2  ;;  %s1372_s28 = sand.u32 1, %s2019_s27  }
 0x67c   : > { %s1373_s21 = scalar_lea.sflag [#allocation6], %s1372_s28 }
 0x67d   : > { %p1680_p13 = pnand %p1683_p12, %p2218_p4 }
 0x67f   : > { %2014 = dma.done.wait (!%p1680_p13), %s1373_s21, 256  }
 0x680   : > { %2016 = vsyncadd (!%p1680_p13), %s1373_s21, 4294967040  ;;  %s21_s14 = sadd.s32 1, %s2055_s14   ;;  %s2782_s5 = sld [smem:[#allocation11_spill]] }
 0x681   : > { %p18_p0 = scmp.ge.s32.totalorder %s21_s14, 8   ;;  %s2783_s0 = sld [smem:[#allocation9_spill]] }
 0x682   : > { %s2784_s8 = sld [smem:[#allocation10_spill]]  ;;  %s2785_s27 = smov %s2031_s30 }
 0x683   : > { %s2786_s28 = smov %s2027_s29  ;;  %s2787_s29 = smov %s2216_s15 }
 0x684   : > { %s2788_s30 = smov %s2035_s9  ;;  %s2790_s10 = smov %s2047_s12 }
 0x685   : > { %s2791_s11 = smov %s2051_s13  ;;  %20 = sbr.rel (!%p18_p0) target bundleno = 10 (0xa), region = 180 }
 0x686   : > { %s2789_s9 = smov %s2782_s5 }
 0x687   : > { %s2792_s12 = smov %s2783_s0 }
 0x688   : > { %s2793_s13 = smov %s2784_s8 }
 0x68c   :  { %1378 = vsyncpa [#allocation6], 1 }
 0x68d   :  { %1380 = vsyncpa [#allocation6 + $0x1], 1 }

</bundles_post_ra>
